<compile_context>
chip_gen: v5e
topology: v5e:2x2
jax: 0.10.0
libtpu: 0.0.40
codegen_flags: <defaults>
</compile_context>

<pallas_src>
import functools

import jax
import jax.numpy as jnp
from jax.experimental import pallas as pl
from jax.experimental.pallas import tpu as pltpu


# ---------------------------------------------------------------------------
# small layout helper: (a, b, d) -> (b, a, d)
# ---------------------------------------------------------------------------
def _swap01(x):
    """Move the head axis to the front; einshape is the layout-aware relayout."""
    if hasattr(pltpu, "einshape"):
        try:
            return pltpu.einshape("abd->bad", x)
        except Exception:  # pragma: no cover - fall back to plain transpose
            pass
    return jnp.transpose(x, (1, 0, 2))


# ---------------------------------------------------------------------------
# In-kernel multi-head attention core (one batch element / one q tile).
# ---------------------------------------------------------------------------
def _mha_core(x_q, kp, vp, wq, wfc, bfc, *, n_head, exact_recip):
    """x_q: (Lq, d_in) compute dtype; kp (scaled by 1/temp), vp: (Lk, d_model) f32.

    Returns (o2 f32 (Lq, d_model), attn f32 (n_head, Lq, Lk)).
    """
    cdt = x_q.dtype
    Lq = x_q.shape[0]
    Lk, d_model = kp.shape
    d_head = d_model // n_head

    # Q projection: one full-width MXU matmul, f32 accumulation.
    qp = jnp.dot(x_q, wq, preferred_element_type=jnp.float32)          # (Lq, d_model)

    # Head-major layout (n_head, L, d_head): heads batched on the MXU,
    # no per-head lane slicing / concatenation.
    qh = _swap01(qp.reshape(Lq, n_head, d_head))                        # f32 (for residual)
    kh = _swap01(kp.astype(cdt).reshape(Lk, n_head, d_head))
    vh = _swap01(vp.astype(cdt).reshape(Lk, n_head, d_head))

    # Scores: contraction over d_head, no explicit K transpose.
    scores = jnp.einsum("hqd,hkd->hqk", qh.astype(cdt), kh,
                        preferred_element_type=jnp.float32)             # (h, Lq, Lk)

    # Softmax in fp32; reciprocal on the EUP for the low-precision path.
    m = jnp.max(scores, axis=-1, keepdims=True)
    e = jnp.exp(scores - m)
    s = jnp.sum(e, axis=-1, keepdims=True)
    if exact_recip:
        attn = e / s
    else:
        attn = e * pl.reciprocal(s, approx=True)

    # Attention output + attn residual (ScaledDotProductAttention.attn_residual=True
    # adds the *unscaled* projected query).
    ctx = jnp.einsum("hqk,hkd->hqd", attn.astype(cdt), vh,
                     preferred_element_type=jnp.float32) + qh           # (h, Lq, d_head)

    # Back to (Lq, d_model).
    o = _swap01(ctx).reshape(Lq, d_model)

    # MultiHeadAttention epilogue: fc -> ReLU -> +residual
    # (residual = x_q iff d_in == d_model, else the pre-fc attention output).
    residual = x_q.astype(jnp.float32) if x_q.shape[-1] == d_model else o
    o2 = jnp.dot(o.astype(cdt), wfc, preferred_element_type=jnp.float32) + bfc
    o2 = jnp.maximum(o2, 0.0) + residual
    return o2, attn


# ---------------------------------------------------------------------------
# Kernel 1: H = MAB0(I, k, v)   -- grid over batch
# ---------------------------------------------------------------------------
def _mab0_kernel(i_ref, k_ref, v_ref, wq_ref, wkv_ref, wfc_ref, bfc_ref,
                 h_ref, *attn_refs, n_head, inv_temp, exact_recip):
    wk = wkv_ref[0]                                  # (d_KV, d_H)
    wv = wkv_ref[1]
    # Fold 1/sqrt(d_head) into the K projection (Q stays unscaled for the residual).
    kp = jnp.dot(k_ref[...], wk, preferred_element_type=jnp.float32) * inv_temp
    vp = jnp.dot(v_ref[...], wv, preferred_element_type=jnp.float32)
    o2, attn = _mha_core(i_ref[...], kp, vp, wq_ref[...], wfc_ref[...], bfc_ref[...],
                         n_head=n_head, exact_recip=exact_recip)
    h_ref[...] = o2.astype(h_ref.dtype)
    if attn_refs:
        attn_refs[0][...] = attn.astype(attn_refs[0].dtype)


# ---------------------------------------------------------------------------
# Kernel 2: O = MAB1(q, H, H)   -- grid over (batch, Lq tiles)
# ---------------------------------------------------------------------------
def _mab1_kernel(q_ref, h_ref, wq_ref, wkv_ref, wfc_ref, bfc_ref,
                 o_ref, *attn_refs, n_head, inv_temp, d_O, exact_recip):
    H = h_ref[...]                                   # (num_inds, d_H)
    # Fused K|V projection of H: one wide matmul instead of two skinny ones.
    kvp = jnp.dot(H, wkv_ref[...], preferred_element_type=jnp.float32)   # (num_inds, 2*d_O)
    kp = kvp[:, :d_O] * inv_temp
    vp = kvp[:, d_O:]
    o2, attn = _mha_core(q_ref[...], kp, vp, wq_ref[...], wfc_ref[...], bfc_ref[...],
                         n_head=n_head, exact_recip=exact_recip)
    o_ref[...] = o2.astype(o_ref.dtype)
    if attn_refs:
        attn_refs[0][...] = attn.astype(attn_refs[0].dtype)


# ---------------------------------------------------------------------------
# Wrapper
# ---------------------------------------------------------------------------
def induced_set_attention(q, k, v, params, *, n_head,
                          compute_dtype=jnp.bfloat16,
                          attn_dtype=jnp.float32,
                          q_block_size=128,
                          return_attn=True,
                          vmem_limit_bytes=64 * 1024 * 1024):
    B, Lq, d_Q = q.shape
    _, Lk, d_KV = k.shape
    inds = params["I"]
    num_inds, d_I = inds.shape
    d_H = params["wq0"].shape[1]
    d_O = params["wq1"].shape[1]
    assert d_H % n_head == 0 and d_O % n_head == 0

    cdt = jnp.dtype(compute_dtype)
    exact_recip = (cdt == jnp.dtype(jnp.float32))
    out_dtype = q.dtype

    cast = lambda x: x.astype(cdt)
    i_c, q_c, k_c, v_c = cast(inds), cast(q), cast(k), cast(v)
    wq0 = cast(params["wq0"])
    wkv0 = cast(jnp.stack([params["wk0"], params["wv0"]], axis=0))       # (2, d_KV, d_H)
    wfc0 = cast(params["wfc0"])
    bfc0 = params["bfc0"].astype(jnp.float32)
    wq1 = cast(params["wq1"])
    wkv1 = cast(jnp.concatenate([params["wk1"], params["wv1"]], axis=1))  # (d_H, 2*d_O)
    wfc1 = cast(params["wfc1"])
    bfc1 = params["bfc1"].astype(jnp.float32)

    inv_t0 = 1.0 / float(d_H // n_head) ** 0.5
    inv_t1 = 1.0 / float(d_O // n_head) ** 0.5

    def full(*shape):
        return pl.BlockSpec(shape, lambda *_: (0,) * len(shape))

    cparams = lambda sem: pltpu.CompilerParams(
        dimension_semantics=sem, vmem_limit_bytes=vmem_limit_bytes)

    # ---- mab0: H = MAB(I, k, v) -------------------------------------------
    mab0_out_shape = [jax.ShapeDtypeStruct((B, num_inds, d_H), cdt)]
    mab0_out_specs = [pl.BlockSpec((None, num_inds, d_H), lambda b: (b, 0, 0))]
    if return_attn:
        mab0_out_shape.append(
            jax.ShapeDtypeStruct((B, n_head, num_inds, Lk), attn_dtype))
        mab0_out_specs.append(
            pl.BlockSpec((None, n_head, num_inds, Lk), lambda b: (b, 0, 0, 0)))

    res0 = pl.pallas_call(
        functools.partial(_mab0_kernel, n_head=n_head, inv_temp=inv_t0,
                          exact_recip=exact_recip),
        out_shape=tuple(mab0_out_shape),
        grid_spec=pltpu.PrefetchScalarGridSpec(
            num_scalar_prefetch=0,
            grid=(B,),
            in_specs=[
                full(num_inds, d_I),                                   # I (shared)
                pl.BlockSpec((None, Lk, d_KV), lambda b: (b, 0, 0)),   # k
                pl.BlockSpec((None, Lk, d_KV), lambda b: (b, 0, 0)),   # v
                full(d_I, d_H),                                        # wq0
                full(2, d_KV, d_H),                                    # [wk0, wv0]
                full(d_H, d_H),                                        # wfc0
                full(1, d_H),                                          # bfc0 (f32)
            ],
            out_specs=mab0_out_specs,
        ),
        compiler_params=cparams(("parallel",)),
    )(i_c, k_c, v_c, wq0, wkv0, wfc0, bfc0)

    if return_attn:
        H, I_attn = res0
    else:
        (H,) = res0
        I_attn = None

    # ---- mab1: O = MAB(q, H, H), tiled over Lq ------------------------------
    TQ = Lq if Lq <= q_block_size else q_block_size
    nq = pl.cdiv(Lq, TQ)

    mab1_out_shape = [jax.ShapeDtypeStruct((B, Lq, d_O), out_dtype)]
    mab1_out_specs = [pl.BlockSpec((None, TQ, d_O), lambda b, t: (b, t, 0))]
    if return_attn:
        mab1_out_shape.append(
            jax.ShapeDtypeStruct((B, n_head, Lq, num_inds), attn_dtype))
        mab1_out_specs.append(
            pl.BlockSpec((None, n_head, TQ, num_inds), lambda b, t: (b, 0, t, 0)))

    res1 = pl.pallas_call(
        functools.partial(_mab1_kernel, n_head=n_head, inv_temp=inv_t1,
                          d_O=d_O, exact_recip=exact_recip),
        out_shape=tuple(mab1_out_shape),
        grid_spec=pltpu.PrefetchScalarGridSpec(
            num_scalar_prefetch=0,
            grid=(B, nq),
            in_specs=[
                pl.BlockSpec((None, TQ, d_Q), lambda b, t: (b, t, 0)),       # q tile
                pl.BlockSpec((None, num_inds, d_H), lambda b, t: (b, 0, 0)), # H
                full(d_Q, d_O),                                              # wq1
                full(d_H, 2 * d_O),                                          # [wk1 | wv1]
                full(d_O, d_O),                                              # wfc1
                full(1, d_O),                                                # bfc1 (f32)
            ],
            out_specs=mab1_out_specs,
        ),
        compiler_params=cparams(("parallel", "parallel")),
    )(q_c, H, wq1, wkv1, wfc1, bfc1)

    if return_attn:
        O, O_attn = res1
    else:
        (O,) = res1
        O_attn = None
    return O, (I_attn, O_attn)


# ---------------------------------------------------------------------------
# Pure-JAX fp32 reference (same math, batched) for correctness checks.
# ---------------------------------------------------------------------------
def _ref_mab(xq, xk, xv, wq, wk, wv, wfc, bfc, n_head):
    B, Lq, _ = xq.shape
    d_model = wq.shape[1]
    d_head = d_model // n_head
    qp, kp, vp = xq @ wq, xk @ wk, xv @ wv
    split = lambda x: x.reshape(x.shape[0], x.shape[1], n_head, d_head).transpose(0, 2, 1, 3)
    qh, kh, vh = split(qp), split(kp), split(vp)
    scores = jnp.einsum("bhqd,bhkd->bhqk", qh / (float(d_head) ** 0.5), kh)
    attn = jax.nn.softmax(scores, axis=-1)
    out = jnp.einsum("bhqk,bhkd->bhqd", attn, vh) + qh
    o = out.transpose(0, 2, 1, 3).reshape(B, Lq, d_model)
    residual = xq if xq.shape[-1] == o.shape[-1] else o
    o2 = jnp.maximum(o @ wfc + bfc, 0.0) + residual
    return o2, attn


def _ref_isab(q, k, v, params, *, n_head):
    B = q.shape[0]
    inds = jnp.broadcast_to(params["I"], (B,) + params["I"].shape)
    H, ia = _ref_mab(inds, k, v, params["wq0"], params["wk0"], params["wv0"],
                     params["wfc0"], params["bfc0"], n_head)
    O, oa = _ref_mab(q, H, H, params["wq1"], params["wk1"], params["wv1"],
                     params["wfc1"], params["bfc1"], n_head)
    return O, ia, oa


# ---------------------------------------------------------------------------
if __name__ == "__main__":
    B, Lq, Lk = 2, 8, 16
    num_inds = 8
    n_head = 4
    d_Q, d_KV, d_I, d_H, d_O = 32, 32, 16, 32, 32   # d_I != d_H exercises the other residual

    key = jax.random.PRNGKey(0)
    ks = jax.random.split(key, 14)
    normal = lambda kk, shape, s=0.1: (s * jax.random.normal(kk, shape)).astype(jnp.float32)

    q = normal(ks[0], (B, Lq, d_Q), 1.0)
    k_in = normal(ks[1], (B, Lk, d_KV), 1.0)
    v_in = normal(ks[2], (B, Lk, d_KV), 1.0)

    params = {
        "I":    normal(ks[3],  (num_inds, d_I), 1.0),   # TensorInductionPoint
        # mab0: MultiHeadAttention(n_head, d_Q=d_I, d_KV=d_KV, d_O=d_H)
        "wq0":  normal(ks[4],  (d_I, d_H)),
        "wk0":  normal(ks[5],  (d_KV, d_H)),
        "wv0":  normal(ks[6],  (d_KV, d_H)),
        "wfc0": normal(ks[7],  (d_H, d_H)),
        "bfc0": normal(ks[8],  (1, d_H)),
        # mab1: MultiHeadAttention(n_head, d_Q=d_Q, d_KV=d_H, d_O=d_O)
        "wq1":  normal(ks[9],  (d_Q, d_O)),
        "wk1":  normal(ks[10], (d_H, d_O)),
        "wv1":  normal(ks[11], (d_H, d_O)),
        "wfc1": normal(ks[12], (d_O, d_O)),
        "bfc1": normal(ks[13], (1, d_O)),
    }

    O_ref, IA_ref, OA_ref = _ref_isab(q, k_in, v_in, params, n_head=n_head)

    # 1) fp32 compute path (exact softmax) -> tight check
    O32, (IA32, OA32) = induced_set_attention(
        q, k_in, v_in, params, n_head=n_head, compute_dtype=jnp.float32)
    jax.block_until_ready((O32, IA32, OA32))
    assert jnp.allclose(O32, O_ref, rtol=1e-4, atol=1e-4), "fp32 output mismatch"
    assert jnp.allclose(IA32, IA_ref, rtol=1e-4, atol=1e-4), "fp32 I_attn mismatch"
    assert jnp.allclose(OA32, OA_ref, rtol=1e-4, atol=1e-4), "fp32 O_attn mismatch"

    # 2) default bf16 MXU path (fp32 accumulation / softmax) -> loose check
    Obf, (IAbf, OAbf) = induced_set_attention(q, k_in, v_in, params, n_head=n_head)
    jax.block_until_ready((Obf, IAbf, OAbf))
    assert jnp.allclose(Obf, O_ref, rtol=5e-2, atol=5e-2), "bf16 output mismatch"
    assert jnp.allclose(IAbf, IA_ref, rtol=5e-2, atol=2e-2), "bf16 I_attn mismatch"
    assert jnp.allclose(OAbf, OA_ref, rtol=5e-2, atol=2e-2), "bf16 O_attn mismatch"

    # 3) attention-map outputs disabled (skips those HBM writebacks entirely)
    Ona, (ia_na, oa_na) = induced_set_attention(
        q, k_in, v_in, params, n_head=n_head, compute_dtype=jnp.float32,
        return_attn=False)
    jax.block_until_ready(Ona)
    assert ia_na is None and oa_na is None
    assert jnp.allclose(Ona, O_ref, rtol=1e-4, atol=1e-4), "no-attn output mismatch"

    print("KERNEL_OK")
</pallas_src>

<mosaic_0001>
module attributes {stable_mosaic.version = 11 : i64} {
  func.func @_mab0_kernel(%arg0: i32, %arg1: memref<8x16xf32, #tpu.memory_space<vmem>>, %arg2: memref<1x16x32xf32, #tpu.memory_space<vmem>>, %arg3: memref<1x16x32xf32, #tpu.memory_space<vmem>>, %arg4: memref<16x32xf32, #tpu.memory_space<vmem>>, %arg5: memref<2x32x32xf32, #tpu.memory_space<vmem>>, %arg6: memref<32x32xf32, #tpu.memory_space<vmem>>, %arg7: memref<1x32xf32, #tpu.memory_space<vmem>>, %arg8: memref<1x8x32xf32, #tpu.memory_space<vmem>>, %arg9: memref<1x4x8x16xf32, #tpu.memory_space<vmem>>) attributes {dimension_semantics = [#tpu.dimension_semantics<parallel>], iteration_bounds = array<i64: 2>, scalar_prefetch = 0 : i64, scratch_operands = 0 : i64, tpu.core_type = #tpu.core_type<tc>, window_params = [{pipeline_mode = #tpu.pipeline_mode<synchronous>, transform_indices = @transform_0, window_bounds = array<i64: 8, 16>}, {transform_indices = @transform_1, window_bounds = array<i64: 1, 16, 32>}, {transform_indices = @transform_2, window_bounds = array<i64: 1, 16, 32>}, {pipeline_mode = #tpu.pipeline_mode<synchronous>, transform_indices = @transform_3, window_bounds = array<i64: 16, 32>}, {pipeline_mode = #tpu.pipeline_mode<synchronous>, transform_indices = @transform_4, window_bounds = array<i64: 2, 32, 32>}, {pipeline_mode = #tpu.pipeline_mode<synchronous>, transform_indices = @transform_5, window_bounds = array<i64: 32, 32>}, {pipeline_mode = #tpu.pipeline_mode<synchronous>, transform_indices = @transform_6, window_bounds = array<i64: 1, 32>}, {transform_indices = @transform_7, window_bounds = array<i64: 1, 8, 32>}, {transform_indices = @transform_8, window_bounds = array<i64: 1, 4, 8, 16>}]} {
    %c0 = arith.constant 0 : index
    %c0_0 = arith.constant 0 : index
    %c0_1 = arith.constant 0 : index
    %0 = vector.load %arg5[%c0, %c0_0, %c0_1] : memref<2x32x32xf32, #tpu.memory_space<vmem>>, vector<1x32x32xf32>
    %1 = vector.shape_cast %0 : vector<1x32x32xf32> to vector<32x32xf32>
    %c1 = arith.constant 1 : index
    %c0_2 = arith.constant 0 : index
    %c0_3 = arith.constant 0 : index
    %2 = vector.load %arg5[%c1, %c0_2, %c0_3] : memref<2x32x32xf32, #tpu.memory_space<vmem>>, vector<1x32x32xf32>
    %3 = vector.shape_cast %2 : vector<1x32x32xf32> to vector<32x32xf32>
    %c0_4 = arith.constant 0 : index
    %c0_5 = arith.constant 0 : index
    %c0_6 = arith.constant 0 : index
    %4 = vector.load %arg2[%c0_4, %c0_5, %c0_6] : memref<1x16x32xf32, #tpu.memory_space<vmem>>, vector<1x16x32xf32>
    %5 = vector.shape_cast %4 : vector<1x16x32xf32> to vector<16x32xf32>
    %cst = arith.constant dense<0.000000e+00> : vector<16x32xf32>
    %6 = tpu.matmul %5, %1, %cst {dimension_numbers = #tpu.dot_dimension_numbers<[1], [0], [0], [1], [0, 0, 1, 1], [], []>} : vector<16x32xf32>, vector<32x32xf32>, vector<16x32xf32> -> vector<16x32xf32>
    %cst_7 = arith.constant 0.353553385 : f32
    %7 = vector.broadcast %cst_7 : f32 to vector<16x32xf32>
    %8 = arith.mulf %6, %7 : vector<16x32xf32>
    %c0_8 = arith.constant 0 : index
    %c0_9 = arith.constant 0 : index
    %c0_10 = arith.constant 0 : index
    %9 = vector.load %arg3[%c0_8, %c0_9, %c0_10] : memref<1x16x32xf32, #tpu.memory_space<vmem>>, vector<1x16x32xf32>
    %10 = vector.shape_cast %9 : vector<1x16x32xf32> to vector<16x32xf32>
    %cst_11 = arith.constant dense<0.000000e+00> : vector<16x32xf32>
    %11 = tpu.matmul %10, %3, %cst_11 {dimension_numbers = #tpu.dot_dimension_numbers<[1], [0], [0], [1], [0, 0, 1, 1], [], []>} : vector<16x32xf32>, vector<32x32xf32>, vector<16x32xf32> -> vector<16x32xf32>
    %c0_12 = arith.constant 0 : index
    %c0_13 = arith.constant 0 : index
    %12 = vector.load %arg1[%c0_12, %c0_13] : memref<8x16xf32, #tpu.memory_space<vmem>>, vector<8x16xf32>
    %c0_14 = arith.constant 0 : index
    %c0_15 = arith.constant 0 : index
    %13 = vector.load %arg4[%c0_14, %c0_15] : memref<16x32xf32, #tpu.memory_space<vmem>>, vector<16x32xf32>
    %c0_16 = arith.constant 0 : index
    %c0_17 = arith.constant 0 : index
    %14 = vector.load %arg6[%c0_16, %c0_17] : memref<32x32xf32, #tpu.memory_space<vmem>>, vector<32x32xf32>
    %c0_18 = arith.constant 0 : index
    %c0_19 = arith.constant 0 : index
    %15 = vector.load %arg7[%c0_18, %c0_19] : memref<1x32xf32, #tpu.memory_space<vmem>>, vector<1x32xf32>
    %cst_20 = arith.constant dense<0.000000e+00> : vector<8x32xf32>
    %16 = tpu.matmul %12, %13, %cst_20 {dimension_numbers = #tpu.dot_dimension_numbers<[1], [0], [0], [1], [0, 0, 1, 1], [], []>} : vector<8x16xf32>, vector<16x32xf32>, vector<8x32xf32> -> vector<8x32xf32>
    %17 = vector.shape_cast %16 : vector<8x32xf32> to vector<8x4x8xf32>
    %18 = tpu.transpose %17, [1, 0, 2] : vector<8x4x8xf32> -> vector<4x8x8xf32>
    %19 = vector.shape_cast %8 : vector<16x32xf32> to vector<16x4x8xf32>
    %20 = tpu.transpose %19, [1, 0, 2] : vector<16x4x8xf32> -> vector<4x16x8xf32>
    %21 = vector.shape_cast %11 : vector<16x32xf32> to vector<16x4x8xf32>
    %22 = tpu.transpose %21, [1, 0, 2] : vector<16x4x8xf32> -> vector<4x16x8xf32>
    "tpu.trace_start"() <{level = 10 : i32, message = "hqd,hkd->hqk"}> : () -> ()
    %cst_21 = arith.constant dense<0.000000e+00> : vector<4x8x16xf32>
    %23 = tpu.matmul %18, %20, %cst_21 {dimension_numbers = #tpu.dot_dimension_numbers<[2], [2], [1], [1], [0, 0, 0, 1, 1, 1], [0], [0]>} : vector<4x8x8xf32>, vector<4x16x8xf32>, vector<4x8x16xf32> -> vector<4x8x16xf32>
    "tpu.trace_stop"() : () -> ()
    %cst_22 = arith.constant dense<0xFF800000> : vector<4x8xf32>
    %24 = vector.multi_reduction <maximumf>, %23, %cst_22 [2] : vector<4x8x16xf32> to vector<4x8xf32>
    %25 = vector.shape_cast %24 : vector<4x8xf32> to vector<4x8x1xf32>
    %26 = vector.broadcast %25 : vector<4x8x1xf32> to vector<4x8x16xf32>
    %27 = arith.subf %23, %26 : vector<4x8x16xf32>
    %28 = math.exp %27 : vector<4x8x16xf32>
    %cst_23 = arith.constant dense<0.000000e+00> : vector<4x8xf32>
    %29 = vector.multi_reduction <add>, %28, %cst_23 [2] : vector<4x8x16xf32> to vector<4x8xf32>
    %30 = vector.shape_cast %29 : vector<4x8xf32> to vector<4x8x1xf32>
    %31 = vector.broadcast %30 : vector<4x8x1xf32> to vector<4x8x16xf32>
    %32 = arith.divf %28, %31 : vector<4x8x16xf32>
    "tpu.trace_start"() <{level = 10 : i32, message = "hqk,hkd->hqd"}> : () -> ()
    %cst_24 = arith.constant dense<0.000000e+00> : vector<4x8x8xf32>
    %33 = tpu.matmul %32, %22, %cst_24 {dimension_numbers = #tpu.dot_dimension_numbers<[2], [1], [1], [2], [0, 0, 0, 1, 1, 2], [0], [0]>} : vector<4x8x16xf32>, vector<4x16x8xf32>, vector<4x8x8xf32> -> vector<4x8x8xf32>
    "tpu.trace_stop"() : () -> ()
    %34 = arith.addf %33, %18 : vector<4x8x8xf32>
    %35 = tpu.transpose %34, [1, 0, 2] : vector<4x8x8xf32> -> vector<8x4x8xf32>
    %36 = vector.shape_cast %35 : vector<8x4x8xf32> to vector<8x32xf32>
    %cst_25 = arith.constant dense<0.000000e+00> : vector<8x32xf32>
    %37 = tpu.matmul %36, %14, %cst_25 {dimension_numbers = #tpu.dot_dimension_numbers<[1], [0], [0], [1], [0, 0, 1, 1], [], []>} : vector<8x32xf32>, vector<32x32xf32>, vector<8x32xf32> -> vector<8x32xf32>
    %38 = vector.broadcast %15 : vector<1x32xf32> to vector<8x32xf32>
    %39 = arith.addf %37, %38 : vector<8x32xf32>
    %cst_26 = arith.constant 0.000000e+00 : f32
    %40 = vector.broadcast %cst_26 : f32 to vector<8x32xf32>
    %41 = arith.maximumf %39, %40 : vector<8x32xf32>
    %42 = arith.addf %41, %36 : vector<8x32xf32>
    %c0_27 = arith.constant 0 : index
    %c0_28 = arith.constant 0 : index
    %c0_29 = arith.constant 0 : index
    %43 = vector.load %arg8[%c0_27, %c0_28, %c0_29] : memref<1x8x32xf32, #tpu.memory_space<vmem>>, vector<1x8x32xf32>
    %44 = vector.shape_cast %43 : vector<1x8x32xf32> to vector<8x32xf32>
    %45 = vector.shape_cast %42 : vector<8x32xf32> to vector<1x8x32xf32>
    tpu.vector_store %arg8[%c0_27, %c0_28, %c0_29], %45 {strides = array<i32>} : memref<1x8x32xf32, #tpu.memory_space<vmem>>, vector<1x8x32xf32>,
    %c0_30 = arith.constant 0 : index
    %c0_31 = arith.constant 0 : index
    %c0_32 = arith.constant 0 : index
    %c0_33 = arith.constant 0 : index
    %46 = vector.load %arg9[%c0_30, %c0_31, %c0_32, %c0_33] : memref<1x4x8x16xf32, #tpu.memory_space<vmem>>, vector<1x4x8x16xf32>
    %47 = vector.shape_cast %46 : vector<1x4x8x16xf32> to vector<4x8x16xf32>
    %48 = vector.shape_cast %32 : vector<4x8x16xf32> to vector<1x4x8x16xf32>
    tpu.vector_store %arg9[%c0_30, %c0_31, %c0_32, %c0_33], %48 {strides = array<i32>} : memref<1x4x8x16xf32, #tpu.memory_space<vmem>>, vector<1x4x8x16xf32>,
    return
  }
  func.func @transform_0(%arg0: i32) -> (i32, i32) {
    %c0_i32 = arith.constant 0 : i32
    %c0_i32_0 = arith.constant 0 : i32
    %c0_i32_1 = arith.constant 0 : i32
    return %c0_i32, %c0_i32_0 : i32, i32
  }
  func.func @transform_1(%arg0: i32) -> (i32, i32, i32) {
    %c0_i32 = arith.constant 0 : i32
    %c0_i32_0 = arith.constant 0 : i32
    %c0_i32_1 = arith.constant 0 : i32
    return %arg0, %c0_i32, %c0_i32_0 : i32, i32, i32
  }
  func.func @transform_2(%arg0: i32) -> (i32, i32, i32) {
    %c0_i32 = arith.constant 0 : i32
    %c0_i32_0 = arith.constant 0 : i32
    %c0_i32_1 = arith.constant 0 : i32
    return %arg0, %c0_i32, %c0_i32_0 : i32, i32, i32
  }
  func.func @transform_3(%arg0: i32) -> (i32, i32) {
    %c0_i32 = arith.constant 0 : i32
    %c0_i32_0 = arith.constant 0 : i32
    %c0_i32_1 = arith.constant 0 : i32
    return %c0_i32, %c0_i32_0 : i32, i32
  }
  func.func @transform_4(%arg0: i32) -> (i32, i32, i32) {
    %c0_i32 = arith.constant 0 : i32
    %c0_i32_0 = arith.constant 0 : i32
    %c0_i32_1 = arith.constant 0 : i32
    %c0_i32_2 = arith.constant 0 : i32
    return %c0_i32, %c0_i32_0, %c0_i32_1 : i32, i32, i32
  }
  func.func @transform_5(%arg0: i32) -> (i32, i32) {
    %c0_i32 = arith.constant 0 : i32
    %c0_i32_0 = arith.constant 0 : i32
    %c0_i32_1 = arith.constant 0 : i32
    return %c0_i32, %c0_i32_0 : i32, i32
  }
  func.func @transform_6(%arg0: i32) -> (i32, i32) {
    %c0_i32 = arith.constant 0 : i32
    %c0_i32_0 = arith.constant 0 : i32
    %c0_i32_1 = arith.constant 0 : i32
    return %c0_i32, %c0_i32_0 : i32, i32
  }
  func.func @transform_7(%arg0: i32) -> (i32, i32, i32) {
    %c0_i32 = arith.constant 0 : i32
    %c0_i32_0 = arith.constant 0 : i32
    %c0_i32_1 = arith.constant 0 : i32
    return %arg0, %c0_i32, %c0_i32_0 : i32, i32, i32
  }
  func.func @transform_8(%arg0: i32) -> (i32, i32, i32, i32) {
    %c0_i32 = arith.constant 0 : i32
    %c0_i32_0 = arith.constant 0 : i32
    %c0_i32_1 = arith.constant 0 : i32
    %c0_i32_2 = arith.constant 0 : i32
    return %arg0, %c0_i32, %c0_i32_0, %c0_i32_1 : i32, i32, i32, i32
  }
}

</mosaic_0001>

<bundles_post_ra>
// kernel: tpu_custom_call.1
= control target key start
LH: loop header
LB: loop body
LE: loop exit
PB: predicated region body
PF: predicated region fallthrough
CT: control target
= control target key end

     0   :  { %s2979_s0 = inlined_call_operand.hbm [shape: f32[8,16], index: 0, kind: input, shape index: {}]   ;;  %s2980_s1 = inlined_call_operand.hbm [shape: f32[2,16,32], index: 1, kind: input, shape index: {}]   ;;  %s2981_s2 = inlined_call_operand.hbm [shape: f32[2,16,32], index: 2, kind: input, shape index: {}]   ;;  %s2982_s3 = inlined_call_operand.hbm [shape: f32[16,32], index: 3, kind: input, shape index: {}]   ;;  %s2983_s4 = inlined_call_operand.hbm [shape: f32[2,32,32], index: 4, kind: input, shape index: {}]   ;;  %s2984_s5 = inlined_call_operand.hbm [shape: f32[32,32], index: 5, kind: input, shape index: {}]   ;;  %s2985_s6 = inlined_call_operand.vmem [shape: f32[1,32], index: 6, kind: input, shape index: {}]   ;;  %s2986_s7 = inlined_call_operand.hbm [shape: f32[2,8,32], index: 7, kind: output, shape index: {0}]   ;;  %s2987_s8 = inlined_call_operand.hbm [shape: f32[2,4,8,16], index: 8, kind: output, shape index: {1}]  }
   0x1   :  { %2998 = sst [smem:[#allocation27_spill]] %s2980_s1 }
   0x2   :  { %2999 = sst [smem:[#allocation28_spill]] %s2982_s3 }
   0x3   :  { %14 = vsyncpa [#allocation3], 0 }
   0x4   :  { %15 = vsyncpa [#allocation6], 0 }
   0x5   :  { %17 = vsyncpa [#allocation6 + $0x1], 0 }
   0x6   :  { %18 = vsyncpa [#allocation9], 0 }
   0x7   :  { %19 = vsyncpa [#allocation12], 0 }
   0x8   :  { %20 = vsyncpa [#allocation4], 0 }
   0x9   :  { %22 = vsyncpa [#allocation4 + $0x1], 0 }
   0xa   :  { %23 = vsyncpa [#allocation15], 0 }
   0xb   :  { %25 = vsyncpa [#allocation15 + $0x1], 0  ;;  %s2360_s27 = smov 0   ;;  %s2362_s28 = smov 0  }
   0xc   :  { %s2364_s29 = smov 0   ;;  %s2366_s30 = smov 0  }
   0xd LB: > { %3000 = sst [smem:[#allocation22_spill]] %s2294_s29  ;;  %s2381_s9 = sadd.s32 4294967295, %s2298_s30   ;;  %s2298_s30 = sphi %s2366_s30, %s3024_s30   ;;  %s2294_s29 = sphi %s2364_s29, %s3026_s29   ;;  %s2290_s28 = sphi %s2362_s28, %s3028_s28   ;;  %s2286_s27 = sphi %s2360_s27, %s3027_s27  }
   0xe   : > { %3001 = sst [smem:[#allocation23_spill]] %s2298_s30  ;;  %s1814_s10 = sadd.s32 4294967294, %s2298_s30  }
   0xf   : > { %p72_p0 = scmp.ne.s32.totalorder %s2290_s28, %s2286_s27  ;;  %p2997_p1 = scmp.eq.s32.totalorder %s2381_s9, 0 }
  0x10   : > { %p206_p2 = scmp.eq.s32.totalorder %s2381_s9, 1  ;;  %p212_p3 = scmp.eq.s32.totalorder %s1814_s10, 1 }
  0x11   : > { %p2390_p4 = por %p2997_p1, %p72_p0  ;;  %p1815_p5 = scmp.ge.s32.totalorder %s2298_s30, 1 }
  0x12   : > { %p2395_p6 = por %p212_p3, %p72_p0  ;;  %p245_p7 = scmp.lt.s32.totalorder %s2298_s30, 3 }
  0x13   : > { %s3005_s3 = sld [smem:[#allocation28_spill]]  ;;  %s2300_s17 = smov [#allocation8]  }
  0x14   : > { %s3003_s12 = scalar_select %p2395_p6, 1, 0 }
  0x15   : > { %p2403_p8 = pnand %p1815_p5, %p245_p7  ;;  %s270_s18 = sshll.u32 %s2300_s17, 4  ;;  %s271_s18 = int_to_ptr.vmem [resolvable:$true] %s270_s18 }
  0x16   : > { %3004 = sst [smem:[#allocation24_spill]] %s3003_s12  ;;  %s2417_s20 = sadd.s32 1, %s2298_s30  }
  0x17   : > { %p1892_p9 = pneg %p2403_p8  ;;  %3008 = sst [smem:[#allocation25_spill]] %s2417_s20 }
  0x18   : > { %s2988_s21 = smov 128   ;;  %s2990_s22 = smov 8  }
  0x19   : > { %s268_s15 = sshll.u32 %s3005_s3, 4  ;;  %p2411_p10 = pnand %p1892_p9, %p2997_p1  ;;  %s269_s15 = int_to_ptr.hbm [resolvable:$true] %s268_s15 }
  0x1a   : > { %s56_s23 = ssub.s32 %s2298_s30, %s2417_s20  ;;  %s59_s24 = sadd.s32 1, %s2294_s29 }
  0x1b   : > { %1898 = dma.hbm_to_vmem [thread:$0]  (!%p2411_p10), %s269_s15, 256, %s271_s18, [#allocation9], %s2988_s21, %s2988_s21, %s2990_s22  }
  0x1c   : > { %p57_p12 = scmp.eq.s32.totalorder %s56_s23, 0  ;;  %p66_p13 = scmp.ne.s32.totalorder %s2294_s29, %s2290_s28 }
  0x1d   : > { %p67_p0 = scmp.eq.s32.totalorder %s2298_s30, 0  ;;  %p1923_p3 = scmp.lt.s32.totalorder %s2298_s30, 2 }
  0x1e   : > { %s2432_s25 = scalar_select %p57_p12, %s2294_s29, %s59_s24  }
  0x1f   : > { %p68_p5 = por %p67_p0, %p66_p13  ;;  %p2436_p7 = por %p206_p2, %p66_p13 }
  0x20   : > { %3009 = sst [smem:[#allocation26_spill]] %s2432_s25  ;;  %s315_s10 = sand.u32 1, %s2298_s30  }
  0x21   : > { %s317_s13 = sand.u32 1, %s2294_s29   ;;  %s1865_s15 = sshll.u32 %s2298_s30, 4 }
  0x22   : > { %s2442_s14 = sshll.u32 %s317_s13, 4  ;;  %s3011_s1 = sld [smem:[#allocation27_spill]] }
  0x23   : > { %s319_s21 = scalar_lea.vmem [#allocation5], %s2442_s14  ;;  %p2451_p2 = pnand %p1923_p3, %p68_p5 }
  0x24   : > { %s327_s22 = sshll.u32 %s319_s21, 4  ;;  %s346_s13 = scalar_lea.hbm %s2981_s2, %s1865_s15  ;;  %s328_s22 = int_to_ptr.vmem [resolvable:$true] %s327_s22 }
  0x25   : > { %s347_s20 = sshll.u32 %s346_s13, 4  ;;  %s2458_s12 = scalar_lea.sflag [#allocation6], %s315_s10  ;;  %s2477_s20 = int_to_ptr.hbm [resolvable:$true] %s347_s20 }
  0x26   : > { %p2042_p12 = pneg %p2451_p2 }
  0x28   : > { %s324_s23 = scalar_lea.hbm %s3011_s1, %s1865_s15  ;;  %s2045_s29 = scalar_lea.hbm %s3011_s1, 32 }
  0x29   : > { %s325_s24 = sshll.u32 %s324_s23, 4  ;;  %s326_s24 = int_to_ptr.hbm [resolvable:$true] %s325_s24 }
  0x2a   : > { %s2038_s17 = sshra.s32 %s326_s24, 4  ;;  %s2039_s17 = int_to_ptr.hbm [resolvable:$true] %s2038_s17 }
  0x2b   : > { %s2040_s21 = scalar_lea.hbm %s2039_s17, 16  ;;  %p2046_p3 = scmp.lt.s32.totalorder %s2039_s17, %s3011_s1 }
  0x2c   : > { %p2041_p9 = scmp.ne.s32.totalorder %s2039_s17, %s2040_s21  ;;  %p2047_p5 = scmp.lt.s32.totalorder %s2045_s29, %s2040_s21 }
  0x2e   : > { %p2043_p13 = pnand %p2042_p12, %p2041_p9  ;;  %p2048_p11 = por %p2047_p5, %p2046_p3 }
  0x30   : > { %p2044_p0 = pneg %p2043_p13 }
  0x32   : > { %p2049_p1 = pnand %p2048_p11, %p2044_p0 }
  0x34   : > { %2052 = shalt.err (!%p2049_p1)
}
  0x35   : > { %s3013_s10 = smov 8   ;;  %s3014_s15 = smov 128  }
  0x36   : > { %1908 = dma.hbm_to_vmem [thread:$0]  (!%p2451_p2), %s326_s24, 256, %s328_s22, %s2458_s12, %s3014_s15, %s3014_s15, %s3013_s10  }
  0x37   : > { %s341_s13 = scalar_lea.vmem [#allocation7], %s2442_s14  ;;  %s257_s21 = sshll.u32 %s2979_s0, 4  ;;  %s258_s21 = int_to_ptr.hbm [resolvable:$true] %s257_s21 }
  0x38   : > { %s2480_s18 = sshll.u32 %s341_s13, 4  ;;  %s2303_s23 = smov [#allocation2]   ;;  %s350_s18 = int_to_ptr.vmem [resolvable:$true] %s2480_s18 }
  0x39   : > { %s259_s29 = sshll.u32 %s2303_s23, 4  ;;  %s282_s22 = sshll.u32 %s2983_s4, 4  ;;  %s260_s29 = int_to_ptr.vmem [resolvable:$true] %s259_s29  ;;  %s283_s22 = int_to_ptr.hbm [resolvable:$true] %s282_s22 }
  0x3a   : > { %1895 = dma.hbm_to_vmem [thread:$0]  (!%p2411_p10), %s258_s21, 128, %s260_s29, [#allocation3]  }
  0x3b   : > { %s296_s13 = sshll.u32 %s2984_s5, 4  ;;  %s2304_s30 = smov [#allocation10]   ;;  %s297_s13 = int_to_ptr.hbm [resolvable:$true] %s296_s13 }
  0x3c   : > { %s284_s17 = sshll.u32 %s2304_s30, 4  ;;  %s2305_s1 = smov [#allocation11]   ;;  %s285_s17 = int_to_ptr.vmem [resolvable:$true] %s284_s17 }
  0x3d   : > { %1901 = dma.hbm_to_vmem [thread:$0]  (!%p2411_p10), %s283_s22, 1024, %s285_s17, [#allocation9], %s3014_s15, %s3014_s15, %s3013_s10  }
  0x3e   : > { %s298_s23 = sshll.u32 %s2305_s1, 4  ;;  %s2158_s21 = sshra.s32 %s2477_s20, 4  ;;  %s299_s23 = int_to_ptr.vmem [resolvable:$true] %s298_s23  ;;  %s2159_s21 = int_to_ptr.hbm [resolvable:$true] %s2158_s21 }
  0x3f   : > { %1904 = dma.hbm_to_vmem [thread:$0]  (!%p2411_p10), %s297_s13, 512, %s299_s23, [#allocation12], %s3014_s15, %s3014_s15, %s3013_s10  }
  0x40   : > { %s2160_s29 = scalar_lea.hbm %s2159_s21, 16  ;;  %s2165_s22 = scalar_lea.hbm %s2981_s2, 32 }
  0x41   : > { %p2161_p1 = scmp.ne.s32.totalorder %s2159_s21, %s2160_s29  ;;  %p2166_p13 = scmp.lt.s32.totalorder %s2159_s21, %s2981_s2 }
  0x42   : > { %p2167_p0 = scmp.lt.s32.totalorder %s2165_s22, %s2160_s29 }
  0x43   : > { %p2163_p11 = pnand %p2161_p1, %p2042_p12 }
  0x44   : > { %p2168_p3 = por %p2167_p0, %p2166_p13 }
  0x45   : > { %p2164_p9 = pneg %p2163_p11 }
  0x47   : > { %p2169_p5 = pnand %p2168_p3, %p2164_p9 }
  0x49   : > { %2172 = shalt.err (!%p2169_p5)
}
  0x4a   : > { %1911 = dma.hbm_to_vmem [thread:$0]  (!%p2451_p2), %s2477_s20, 256, %s350_s18, %s2458_s12, %s3014_s15, %s3014_s15, %s3013_s10  }
  0x4b   : > { %361 = sbr.rel (%p2403_p8) target bundleno = 1213 (0x4bd), region = 48  ;;  %p3015_p10 = scmp.eq.s32.totalorder (!%p2403_p8), %s2381_s9, 0 }
  0x50   : > { %2261 = dma.done.wait (%p3015_p10), [#allocation3], 128   ;;  %p3016_p12 = pmov %p3015_p10 }
  0x51   : > { %s368_s19 = sand.u32 1, %s2381_s9   ;;  %s2529_s3 = sand.u32 1, %s2290_s28  }
  0x52   : > { %2263 = vsyncadd (%p3016_p12), [#allocation3], 4294967168  ;;  %s1829_s13 = sshll.u32 %s2529_s3, 4  ;;  %s369_s17 = scalar_lea.sflag [#allocation6], %s368_s19 }
  0x53   : > { %s372_s1 = scalar_lea.vmem [#allocation5], %s1829_s13 }
  0x54   : > { %2265 = dma.done.wait (%p2390_p4), %s369_s17, 512  }
  0x55   : > { %2267 = vsyncadd (%p2390_p4), %s369_s17, 4294966784  ;;  %s2536_s12 = scalar_lea.vmem [#allocation7], %s1829_s13  ;;  %p3017_p8 = pmov %p3015_p10 }
  0x57   : > { %2269 = dma.done.wait (%p3017_p8), [#allocation9], 1280   ;;  %p3018_p2 = pmov %p3017_p8 }
  0x59   : > { %2271 = vsyncadd (%p3018_p2), [#allocation9], 4294966016  ;;  %p3019_p1 = pmov %p3018_p2 }
  0x5b   : > { %2273 = dma.done.wait (%p3019_p1), [#allocation12], 512   ;;  %p3020_p11 = pmov %p3019_p1 }
  0x5c   : > { %v444_v0 = vld [vmem:[#allocation10 + $0x18] sm:$0xff]  ;;  %v443_v1 = vld [vmem:[#allocation10 + $0x10] sm:$0xff]  ;;  %v442_v2 = vld [vmem:[#allocation10 + $0x8] sm:$0xff]  ;;  %vm523_vm0 = vcmask 130048   ;;  %vm452_vm1 = vcmask 261120   ;;  %s2306_s11 = smov 112  }
  0x5d   : > { %2275 = vsyncadd (%p3020_p11), [#allocation12], 4294966784  ;;  %471 = vmatpush.msra.mxu0 %v444_v0  ;;  %v517_v3 = vld [vmem:[#allocation8 + $0x8] sm:$0xff]  ;;  %v516_v4 = vld [vmem:[#allocation8] sm:$0xff]  ;;  %s2307_s16 = smov 120   ;;  %s2308_s20 = smov 104  }
  0x5e   : > { %541 = vmatpush.msra.mxu2 %v517_v3  ;;  %v515_v5 = vld [vmem:[#allocation2] sm:$0xff]  ;;  %v441_v6 = vld [vmem:[#allocation10] sm:$0xff]  ;;  %v2309_v16 = vmov 1983009808   ;;  %vm558_vm2 = vcmask 1047556   ;;  %vm1148_vm3 = vcmask 64512  }
  0x5f   : > { %472 = vmatpush.msra.mxu0 %v443_v1  ;;  %v450_v7 = vld [vmem:[%s372_s1] sm:$0xff]  ;;  %v451_v8 = vld [vmem:[%s372_s1 + $0x8] sm:$0xff]  ;;  %v563_v17 = vunpack.c.l.s4 %v2309_v16  ;;  %v2310_v23 = vmov 1934713408   ;;  %s1835_s10 = sshll.u32 %s2529_s3, 5  ;;  %s2311_s18 = smov 24  }
  0x60   : > { %542 = vmatpush.msra.mxu2 %v516_v4  ;;  %v587_v24 = vunpack.c.l.s4 %v2310_v23  ;;  %s2860_s15 = scalar_lea.vmem [#allocation14], %s1835_s10  ;;  %s2312_s23 = smov 16  }
  0x61   : > { %473 = vmatpush.msra.mxu0 %v442_v2  ;;  %1840 = vmatmul.msk.f32.vlgmr.msra.gmra.mxu2 %vm523_vm0, %v515_v5  ;;  %v2569_v20 = vunpack.c.0.s8 %v563_v17  ;;  %s2313_s21 = smov 8   ;;  %s1867_s29 = sshll.u32 %s2381_s9, 5 }
  0x62   : > { %v2574_v29 = vunpack.c.0.s8 %v587_v24  ;;  %s1644_s25 = sshll.u32 %s2860_s15, 4  ;;  %s1643_s24 = scalar_lea.hbm %s2987_s8, %s1867_s29  ;;  %s1645_s25 = int_to_ptr.vmem [resolvable:$true] %s1644_s25 }
  0x63   : > { %474 = vmatpush.msra.mxu0 %v441_v6  ;;  %s1646_s30 = sshll.u32 %s1643_s24, 4  ;;  %s1618_s19 = scalar_lea.sflag [#allocation15], %s2529_s3  ;;  %s1647_s30 = int_to_ptr.hbm [resolvable:$true] %s1646_s30 }
  0x64   : > { %1836 = vmatmul.msk.f32.vlgmr.msra.gmra.mxu0 %vm452_vm1, %v450_v7  ;;  %s2202_s13 = sshra.s32 %s1647_s30, 4  ;;  %s2203_s13 = int_to_ptr.hbm [resolvable:$true] %s2202_s13 }
  0x65   : > { %s2204_s17 = scalar_lea.hbm %s2203_s13, 32  ;;  %p2209_p0 = scmp.lt.s32.totalorder %s2203_s13, %s2987_s8 }
  0x66   : > { %p2205_p4 = scmp.ne.s32.totalorder %s2203_s13, %s2204_s17 }
  0x68   : > { %p2206_p9 = pnand %p2205_p4, %p2436_p7 }
  0x6a   : > { %p2207_p13 = pneg %p2206_p9 }
  0x6c   : > { %1837 = vmatmul.msk.f32.gmra.mxu0 %vm452_vm1, %v451_v8 }
  0xe1   : > { %v476_v9 = vpop.f32.mrf.mxu0 }
  0xe2   : > { %v482_v10 = vmul.f32 0.35355338, %v476_v9 }
  0xe4   : > { %676 = vrot.lane.b32.xlu2 %v482_v10, %s2306_s11  ;;  %670 = vrot.lane.b32.xlu1 %v482_v10, %s2307_s16  ;;  %v2558_v13 = vpop.f32.mrf.mxu2  ;;  %v690_v19 = vrot.slane %v482_v10, 4 }
  0xe5   : > { %v560_v7 = vrot.slane %v2558_v13, 4 }
  0xe9   : > { %v479_v11 = vpop.f32.mrf.mxu0 }
  0xea   : > { %v2551_v12 = vmul.f32 0.35355338, %v479_v11 }
  0xec   : > { %682 = vrot.lane.b32.xlu2 %v482_v10, %s2308_s20  ;;  %684 = vrot.lane.b32.xlu1 %v2551_v12, %s2308_s20  ;;  %v746_v9 = vrot.slane %v2551_v12, 4 }
  0xed   : > { %672 = vrot.lane.b32.xlu0 %v2551_v12, %s2307_s16 }
  0xf4   : > { %551 = vrot.lane.b32.xlu1 %v2558_v13, %s2306_s11  ;;  %554 = vrot.lane.b32.xlu2 %v2558_v13, %s2308_s20 }
  0xf5   : > { %678 = vrot.lane.b32.xlu0 %v2551_v12, %s2306_s11 }
  0xfd   : > { %548 = vrot.lane.b32.xlu0 %v2558_v13, %s2307_s16 }
 0x13e   : > { %v677_v14 = vpop.permute.xlu2 %676 }
 0x13f   : > { %v688_v15 = vrot.slane %v677_v14, 4  ;;  %v691_v22 = vsel %vm558_vm2, %v677_v14, %v690_v19 }
 0x140   : > { %v699_v27 = vperm.slane %v691_v22, %v2569_v20 }
 0x141   : > { %v689_v18 = vsel %vm558_vm2, %v688_v15, %v482_v10 }
 0x142   : > { %v695_v25 = vperm.slane %v689_v18, %v2569_v20  ;;  %v726_v35 = vrot.slane %v699_v27, 4 }
 0x144   : > { %v714_v32 = vrot.slane %v695_v25, 4 }
 0x146   : > { %v683_v21 = vpop.permute.xlu2 %682 }
 0x147   : > { %v700_v26 = vrot.slane %v683_v21, 4 }
 0x156   : > { %v671_v28 = vpop.permute.xlu1 %670 }
 0x157   : > { %v701_v30 = vsel %vm558_vm2, %v700_v26, %v671_v28  ;;  %v702_v31 = vrot.slane %v671_v28, 4 }
 0x158   : > { %v707_v33 = vperm.slane %v701_v30, %v2569_v20 }
 0x159   : > { %v703_v34 = vsel %vm558_vm2, %v683_v21, %v702_v31 }
 0x15a   : > { %v711_v36 = vperm.slane %v703_v34, %v2569_v20  ;;  %v712_v37 = vrot.slane %v707_v33, 4  ;;  %v715_v38 = vsel %vm558_vm2, %v707_v33, %v714_v32 }
 0x15b   : > { %v723_v39 = vperm.slane %v715_v38, %v2574_v29 }
 0x15c   : > { %v713_v40 = vsel %vm558_vm2, %v712_v37, %v695_v25  ;;  %v724_v41 = vrot.slane %v711_v36, 4  ;;  %v727_v42 = vsel %vm558_vm2, %v711_v36, %v726_v35  ;;  %v555_v25 = vpop.permute.xlu2 %554 }
 0x15d   : > { %v719_v43 = vperm.slane %v713_v40, %v2574_v29  ;;  %v735_v44 = vperm.slane %v727_v42, %v2574_v29  ;;  %v738_v45 = vrot.slane %v723_v39, 4  ;;  %v570_v37 = vrot.slane %v555_v25, 4 }
 0x15e   : > { %v725_v46 = vsel %vm558_vm2, %v724_v41, %v699_v27  ;;  %v685_v47 = vpop.permute.xlu1 %684 }
 0x15f   : > { %v731_v48 = vperm.slane %v725_v46, %v2574_v29  ;;  %v736_v49 = vrot.slane %v719_v43, 4  ;;  %v739_v50 = vsel %vm558_vm2, 0.0, %v738_v45  ;;  %v742_v51 = vrot.slane %v735_v44, 4  ;;  %v673_v52 = vpop.permute.xlu0 %672 }
 0x160   : > { %v805_v53 = vrot.slane %v739_v50, 4  ;;  %v756_v54 = vrot.slane %v685_v47, 4  ;;  %v758_v55 = vrot.slane %v673_v52, 4  ;;  %v800_v56 = vsel %vm558_vm2, %v738_v45, %v719_v43 }
 0x161   : > { %v737_v57 = vsel %vm558_vm2, 0.0, %v736_v49  ;;  %v740_v58 = vrot.slane %v731_v48, 4  ;;  %v743_v59 = vsel %vm558_vm2, 0.0, %v742_v51  ;;  %v804_v62 = vperm.slane %v800_v56, %v2569_v20 }
 0x162   : > { %v816_v60 = vrot.slane %v743_v59, 4  ;;  %v759_v61 = vsel %vm558_vm2, %v685_v47, %v758_v55  ;;  %v757_v0 = vsel %vm558_vm2, %v756_v54, %v673_v52  ;;  %v806_v1 = vsel %vm558_vm2, %v805_v53, %v737_v57 }
 0x163   : > { %v741_v63 = vsel %vm558_vm2, 0.0, %v740_v58  ;;  %v810_v2 = vperm.slane %v806_v1, %v2569_v20  ;;  %v767_v4 = vperm.slane %v759_v61, %v2569_v20  ;;  %v763_v6 = vperm.slane %v757_v0, %v2569_v20 }
 0x164   : > { %v817_v3 = vsel %vm558_vm2, %v816_v60, %v741_v63  ;;  %v824_v10 = vrot.slane %v804_v62, 4  ;;  %v811_v15 = vsel %vm558_vm2, %v742_v51, %v731_v48 }
 0x165   : > { %v2601_v5 = vperm.slane %v817_v3, %v2569_v20  ;;  %v822_v16 = vrot.slane %v810_v2, 4  ;;  %v780_v22 = vrot.slane %v767_v4, 4  ;;  %v768_v26 = vrot.slane %v763_v6, 4 }
 0x166   : > { %v552_v8 = vpop.permute.xlu1 %551  ;;  %v2616_v28 = vperm.slane %v811_v15, %v2569_v20  ;;  %v825_v30 = vsel %vm558_vm2, %v810_v2, %v824_v10 }
 0x167   : > { %v557_v11 = vrot.slane %v552_v8, 4  ;;  %v679_v14 = vpop.permute.xlu0 %678  ;;  %v561_v17 = vsel %vm558_vm2, %v552_v8, %v560_v7  ;;  %v834_v21 = vrot.slane %v2601_v5, 4  ;;  %v823_v36 = vsel %vm558_vm2, %v822_v16, %v804_v62  ;;  %v449_v7 = vld [vmem:[#allocation10 + $0x38] sm:$0xff]  ;;  %v448_v8 = vld [vmem:[#allocation10 + $0x30] sm:$0xff] }
 0x168   : > { %v744_v18 = vrot.slane %v679_v14, 4  ;;  %v747_v19 = vsel %vm558_vm2, %v679_v14, %v746_v9  ;;  %v569_v31 = vperm.slane %v561_v17, %v2569_v20  ;;  %v2632_v44 = vperm.slane %v825_v30, %v2574_v29  ;;  %504 = vmatpush.msra.mxu1 %v449_v7  ;;  %v446_v30 = vld [vmem:[#allocation10 + $0x20] sm:$0xff] }
 0x169   : > { %v559_v23 = vsel %vm558_vm2, %v557_v11, %v2558_v13  ;;  %v755_v24 = vperm.slane %v747_v19, %v2569_v20  ;;  %v2636_v48 = vperm.slane %v823_v36, %v2574_v29  ;;  %v836_v57 = vrot.slane %v2616_v28, 4  ;;  %v447_v19 = vld [vmem:[#allocation10 + $0x28] sm:$0xff] }
 0x16a   : > { %v745_v27 = vsel %vm558_vm2, %v744_v18, %v2551_v12  ;;  %v565_v13 = vperm.slane %v559_v23, %v2569_v20  ;;  %v835_v12 = vsel %vm558_vm2, %v834_v21, %v2616_v28  ;;  %v596_v45 = vrot.slane %v569_v31, 4  ;;  %505 = vmatpush.msra.mxu1 %v448_v8 }
 0x16b   : > { %v751_v32 = vperm.slane %v745_v27, %v2569_v20  ;;  %v781_v33 = vsel %vm558_vm2, %v780_v22, %v755_v24  ;;  %v782_v34 = vrot.slane %v755_v24, 4  ;;  %v2639_v49 = vperm.slane %v835_v12, %v2574_v29 }
 0x16c   : > { %v787_v35 = vperm.slane %v781_v33, %v2574_v29  ;;  %v584_v50 = vrot.slane %v565_v13, 4  ;;  %506 = vmatpush.msra.mxu1 %v447_v19 }
 0x16d   : > { %v769_v38 = vsel %vm558_vm2, %v768_v26, %v751_v32  ;;  %v770_v39 = vrot.slane %v751_v32, 4  ;;  %v783_v40 = vsel %vm558_vm2, %v767_v4, %v782_v34 }
 0x16e   : > { %v775_v41 = vperm.slane %v769_v38, %v2574_v29  ;;  %v791_v42 = vperm.slane %v783_v40, %v2574_v29  ;;  %v796_v43 = vrot.slane %v787_v35, 4  ;;  %507 = vmatpush.msra.mxu1 %v446_v30 }
 0x16f   : > { %v771_v46 = vsel %vm558_vm2, %v763_v6, %v770_v39  ;;  %v549_v47 = vpop.permute.xlu0 %548 }
 0x170   : > { %v779_v51 = vperm.slane %v771_v46, %v2574_v29  ;;  %v792_v52 = vrot.slane %v775_v41, 4  ;;  %v798_v53 = vrot.slane %v791_v42, 4  ;;  %v797_v54 = vsel %vm558_vm2, 0.0, %v796_v43 }
 0x171   : > { %v571_v55 = vsel %vm558_vm2, %v570_v37, %v549_v47  ;;  %v572_v56 = vrot.slane %v549_v47, 4 }
 0x172   : > { %v794_v58 = vrot.slane %v779_v51, 4  ;;  %v799_v59 = vsel %vm558_vm2, 0.0, %v798_v53  ;;  %v865_v60 = vsel %vm558_vm2, %v798_v53, %v787_v35  ;;  %v577_v61 = vperm.slane %v571_v55, %v2569_v20  ;;  %v484_v35 = vld [vmem:[%s2536_s12] sm:$0xff] }
 0x173   : > { %v870_v62 = vrot.slane %v799_v59, 4  ;;  %v573_v63 = vsel %vm558_vm2, %v555_v25, %v572_v56  ;;  %v793_v0 = vsel %vm558_vm2, 0.0, %v792_v52  ;;  %v869_v1 = vperm.slane %v865_v60, %v2569_v20  ;;  %1838 = vmatmul.msk.f32.vlgmr.msra.gmra.mxu1 %vm452_vm1, %v484_v35 }
 0x174   : > { %v795_v2 = vsel %vm558_vm2, 0.0, %v794_v58  ;;  %v581_v3 = vperm.slane %v573_v63, %v2569_v20  ;;  %v582_v4 = vrot.slane %v577_v61, 4  ;;  %v585_v6 = vsel %vm558_vm2, %v577_v61, %v584_v50 }
 0x175   : > { %v859_v9 = vrot.slane %v795_v2, 4  ;;  %v871_v10 = vsel %vm558_vm2, %v870_v62, %v797_v54  ;;  %v593_v11 = vperm.slane %v585_v6, %v2574_v29  ;;  %v854_v14 = vsel %vm558_vm2, %v794_v58, %v775_v41 }
 0x176   : > { %v583_v15 = vsel %vm558_vm2, %v582_v4, %v565_v13  ;;  %v594_v16 = vrot.slane %v581_v3, 4  ;;  %v597_v17 = vsel %vm558_vm2, %v581_v3, %v596_v45  ;;  %v858_v18 = vperm.slane %v854_v14, %v2569_v20  ;;  %v485_v4 = vld [vmem:[%s2536_s12 + $0x8] sm:$0xff] }
 0x177   : > { %v589_v21 = vperm.slane %v583_v15, %v2574_v29  ;;  %v605_v22 = vperm.slane %v597_v17, %v2574_v29  ;;  %v608_v23 = vrot.slane %v593_v11, 4  ;;  %v860_v24 = vsel %vm558_vm2, %v859_v9, %v793_v0 }
 0x178   : > { %v595_v25 = vsel %vm558_vm2, %v594_v16, %v569_v31  ;;  %v864_v26 = vperm.slane %v860_v24, %v2569_v20  ;;  %v875_v27 = vperm.slane %v871_v10, %v2569_v20  ;;  %v878_v28 = vrot.slane %v858_v18, 4 }
 0x179   : > { %v601_v32 = vperm.slane %v595_v25, %v2574_v29  ;;  %v606_v33 = vrot.slane %v589_v21, 4  ;;  %v609_v34 = vsel %vm558_vm2, 0.0, %v608_v23  ;;  %v612_v13 = vrot.slane %v605_v22, 4 }
 0x17a   : > { %v619_v36 = vrot.slane %v609_v34, 4  ;;  %v876_v12 = vrot.slane %v864_v26, 4  ;;  %v888_v37 = vrot.slane %v875_v27, 4  ;;  %v879_v38 = vsel %vm558_vm2, %v864_v26, %v878_v28 }
 0x17b   : > { %v607_v31 = vsel %vm558_vm2, 0.0, %v606_v33  ;;  %v610_v39 = vrot.slane %v601_v32, 4  ;;  %v613_v40 = vsel %vm558_vm2, 0.0, %v612_v13  ;;  %v837_v41 = vsel %vm558_vm2, %v2601_v5, %v836_v57  ;;  %1839 = vmatmul.msk.f32.gmra.mxu1 %vm452_vm1, %v485_v4 }
 0x17c   : > { %v630_v42 = vrot.slane %v613_v40, 4  ;;  %v877_v43 = vsel %vm558_vm2, %v876_v12, %v858_v18  ;;  %v889_v45 = vsel %vm558_vm2, %v888_v37, %v869_v1  ;;  %v890_v46 = vrot.slane %v869_v1, 4 }
 0x17d   : > { %v611_v47 = vsel %vm558_vm2, 0.0, %v610_v39  ;;  %v883_v50 = vperm.slane %v877_v43, %v2574_v29  ;;  %v895_v51 = vperm.slane %v889_v45, %v2574_v29  ;;  %v887_v52 = vperm.slane %v879_v38, %v2574_v29 }
 0x17e   : > { %v891_v53 = vsel %vm558_vm2, %v875_v27, %v890_v46  ;;  %v614_v5 = vsel %vm558_vm2, %v608_v23, %v589_v21  ;;  %v620_v54 = vsel %vm558_vm2, %v619_v36, %v607_v31  ;;  %v625_v55 = vsel %vm558_vm2, %v612_v13, %v601_v32 }
 0x17f   : > { %v900_v56 = vrot.slane %v895_v51, 4  ;;  %v902_v57 = vrot.slane %v883_v50, 4  ;;  %v899_v58 = vperm.slane %v891_v53, %v2574_v29  ;;  %v618_v59 = vperm.slane %v614_v5, %v2569_v20 }
 0x180   : > { %v848_v60 = vrot.slane %v2636_v48, 4  ;;  %v624_v61 = vperm.slane %v620_v54, %v2569_v20  ;;  %v629_v62 = vperm.slane %v625_v55, %v2569_v20  ;;  %v631_v63 = vsel %vm558_vm2, %v630_v42, %v611_v47 }
 0x181   : > { %v901_v0 = vsel %vm558_vm2, %v900_v56, %v883_v50  ;;  %v903_v1 = vsel %vm558_vm2, %v895_v51, %v902_v57  ;;  %v846_v2 = vrot.slane %v2639_v49, 4  ;;  %v906_v3 = vrot.slane %v887_v52, 4 }
 0x182   : > { %1841 = vmatpush.xpose.msk.msra.mxu3 %vm1148_vm3, %v901_v0  ;;  %1844 = vmatpush.xpose.msk.msrb.mxu2 %vm1148_vm3, %v903_v1  ;;  %v904_v6 = vrot.slane %v899_v58, 4  ;;  %v635_v7 = vperm.slane %v631_v63, %v2569_v20  ;;  %v636_v8 = vrot.slane %v624_v61, 4  ;;  %v845_v9 = vperm.slane %v837_v41, %v2574_v29 }
 0x183   : > { %v638_v10 = vrot.slane %v618_v59, 4  ;;  %v849_v11 = vsel %vm558_vm2, %v2639_v49, %v848_v60  ;;  %v650_v16 = vrot.slane %v629_v62, 4  ;;  %v847_v17 = vsel %vm558_vm2, %v846_v2, %v2636_v48 }
 0x184   : > { %v637_v14 = vsel %vm558_vm2, %v636_v8, %v618_v59  ;;  %v648_v15 = vrot.slane %v635_v7, 4  ;;  %v907_v18 = vsel %vm558_vm2, %v899_v58, %v906_v3  ;;  %v852_v21 = vrot.slane %v2632_v44, 4 }
 0x185   : > { %v643_v19 = vperm.slane %v637_v14, %v2574_v29  ;;  %v905_v22 = vsel %vm558_vm2, %v904_v6, %v887_v52  ;;  %v850_v23 = vrot.slane %v845_v9, 4  ;;  %v639_v24 = vsel %vm558_vm2, %v624_v61, %v638_v10 }
 0x186   : > { %1842 = vmatpush.xpose.msk.msra.mxu3 %vm1148_vm3, %v847_v17  ;;  %1845 = vmatpush.xpose.msk.msrb.mxu2 %vm1148_vm3, %v849_v11  ;;  %v649_v49 = vsel %vm558_vm2, %v648_v15, %v629_v62  ;;  %v651_v26 = vsel %vm558_vm2, %v635_v7, %v650_v16  ;;  %v647_v30 = vperm.slane %v639_v24, %v2574_v29 }
 0x187   : > { %v655_v48 = vperm.slane %v649_v49, %v2574_v29  ;;  %v662_v25 = vrot.slane %v643_v19, 4  ;;  %v851_v32 = vsel %vm558_vm2, %v850_v23, %v2632_v44  ;;  %v853_v33 = vsel %vm558_vm2, %v845_v9, %v852_v21 }
 0x188   : > { %v659_v13 = vperm.slane %v651_v26, %v2574_v29  ;;  %v666_v35 = vrot.slane %v647_v30, 4 }
 0x189   : > { %v660_v27 = vrot.slane %v655_v48, 4  ;;  %v2718_v28 = vsel %vm558_vm2, %v655_v48, %v662_v25 }
 0x18a   : > { %1847 = vmatpush.xpose.msk.msrb.mxu3 %vm1148_vm3, %v905_v22  ;;  %1850 = vmatpush.xpose.msk.msra.mxu2 %vm1148_vm3, %v907_v18  ;;  %v664_v36 = vrot.slane %v659_v13, 4  ;;  %v2735_v12 = vsel %vm558_vm2, %v659_v13, %v666_v35 }
 0x18b   : > { %1846 = vmatmul.msk.f32.vlgmr.msrb.gmra.mxu2 %vm1148_vm3, %v2718_v28  ;;  %v2727_v34 = vsel %vm558_vm2, %v660_v27, %v643_v19 }
 0x18c   : > { %1843 = vmatmul.msk.f32.vlgmr.msra.gmra.mxu3 %vm1148_vm3, %v2727_v34  ;;  %v2740_v44 = vsel %vm558_vm2, %v664_v36, %v647_v30 }
 0x18e   : > { %1848 = vmatpush.xpose.msk.msrb.mxu3 %vm1148_vm3, %v851_v32  ;;  %1851 = vmatpush.xpose.msk.msra.mxu2 %vm1148_vm3, %v853_v33 }
 0x193   : > { %1852 = vmatmul.msk.f32.vlgmr.msra.gmra.mxu2 %vm1148_vm3, %v2735_v12 }
 0x194   : > { %1849 = vmatmul.msk.f32.vlgmr.msrb.gmra.mxu3 %vm1148_vm3, %v2740_v44 }
 0x1f0   : > { %v2748_v45 = vpop.f32.mrf.mxu1 }
 0x1f1   : > { %v930_v48 = vrot.slane %v2748_v45, 4 }
 0x1f8   : > { %v2750_v46 = vpop.f32.mrf.mxu1 }
 0x1f9   : > { %v1976_v47 = vpack.i.bf16 %v2748_v45, %v2750_v46  ;;  %v986_v25 = vrot.slane %v2750_v46, 4 }
 0x20e   : > { %v1204_v37 = vpop.f32.mrf.mxu2 }
 0x20f   : > { %v1175_v38 = vpop.f32.mrf.mxu3  ;;  %v1268_v42 = vsel %vm523_vm0, %v1204_v37, -inf }
 0x210   : > { %v1265_v31 = vsel %vm523_vm0, %v1175_v38, -inf }
 0x211   : > { %1266 = vmax.xlane.f32.xlu2 %v1265_v31 }
 0x216   : > { %v1262_v39 = vpop.f32.mrf.mxu2 }
 0x217   : > { %v1274_v40 = vsel %vm523_vm0, %v1262_v39, -inf  ;;  %v1233_v41 = vpop.f32.mrf.mxu3 }
 0x218   : > { %1275 = vmax.xlane.f32.xlu1 %v1274_v40  ;;  %v1271_v43 = vsel %vm523_vm0, %v1233_v41, -inf }
 0x219   : > { %1269 = vmax.xlane.f32.xlu2 %v1268_v42  ;;  %1272 = vmax.xlane.f32.xlu0 %v1271_v43 }
 0x22d   : > { %1977 = vrot.lane.b32.xlu0 %v1976_v47, %s2307_s16 }
 0x231   : > { %1982 = vrot.lane.b32.xlu1 %v1976_v47, %s2306_s11  ;;  %1987 = vrot.lane.b32.xlu2 %v1976_v47, %s2308_s20  ;;  %s2208_s11 = scalar_lea.hbm %s2987_s8, 64 }
 0x232   : > { %p2210_p3 = scmp.lt.s32.totalorder %s2208_s11, %s2204_s17 }
 0x234   : > { %p2211_p5 = por %p2210_p3, %p2209_p0 }
 0x236   : > { %p2212_p10 = pnand %p2211_p5, %p2207_p13 }
 0x284   : > { %v1267_v50 = vpop.xlane.xlu2 %1266 }
 0x285   : > { %v1277_v51 = vsub.f32 %v1175_v38, %v1267_v50 }
 0x287   : > { %v1281_v52 = vmul.f32 1.442695, %v1277_v51 }
 0x289   : > { %1992 = vpow2.f32 %v1281_v52 }
 0x28b   : > { %v1276_v53 = vpop.xlane.xlu1 %1275 }
 0x28c   : > { %v1280_v5 = vsub.f32 %v1262_v39, %v1276_v53  ;;  %v1273_v54 = vpop.xlane.xlu0 %1272  ;;  %v1270_v55 = vpop.xlane.xlu2 %1269 }
 0x28d   : > { %v1279_v56 = vsub.f32 %v1233_v41, %v1273_v54  ;;  %v1278_v60 = vsub.f32 %v1204_v37, %v1270_v55 }
 0x28e   : > { %v1287_v57 = vmul.f32 1.442695, %v1280_v5 }
 0x28f   : > { %v2757_v58 = vpop.eup %1992  ;;  %v1285_v59 = vmul.f32 1.442695, %v1279_v56  ;;  %v1283_v62 = vmul.f32 1.442695, %v1278_v60 }
 0x290   : > { %1994 = vpow2.f32 %v1287_v57  ;;  %v1289_v61 = vsel %vm523_vm0, %v2757_v58, 0.0 }
 0x291   : > { %1290 = vadd.xlane.f32.xlu2 %v1289_v61  ;;  %1996 = vpow2.f32 %v1285_v59 }
 0x292   : > { %1998 = vpow2.f32 %v1283_v62 }
 0x294   : > { %v1988_v1 = vpop.permute.xlu2 %1987 }
 0x295   : > { %v1990_v4 = vunpack.i.h.bf16 %v1988_v1  ;;  %v1989_v6 = vunpack.i.l.bf16 %v1988_v1 }
 0x296   : > { %v2761_v63 = vpop.eup %1994 }
 0x297   : > { %v1298_v0 = vsel %vm523_vm0, %v2761_v63, 0.0  ;;  %v2765_v2 = vpop.eup %1996  ;;  %v940_v8 = vrot.slane %v1990_v4, 4  ;;  %v996_v9 = vrot.slane %v1989_v6, 4 }
 0x298   : > { %1299 = vadd.xlane.f32.xlu1 %v1298_v0  ;;  %v1295_v3 = vsel %vm523_vm0, %v2765_v2, 0.0  ;;  %v2769_v7 = vpop.eup %1998 }
 0x299   : > { %1296 = vadd.xlane.f32.xlu0 %v1295_v3  ;;  %v1292_v15 = vsel %vm523_vm0, %v2769_v7, 0.0 }
 0x29f   : > { %v1978_v10 = vpop.permute.xlu0 %1977 }
 0x2a0   : > { %v1980_v11 = vunpack.i.h.bf16 %v1978_v10  ;;  %v1979_v14 = vunpack.i.l.bf16 %v1978_v10 }
 0x2a1   : > { %1293 = vadd.xlane.f32.xlu0 %v1292_v15 }
 0x2a2   : > { %v942_v16 = vrot.slane %v1980_v11, 4  ;;  %v998_v17 = vrot.slane %v1979_v14, 4  ;;  %v941_v18 = vsel %vm558_vm2, %v940_v8, %v1980_v11  ;;  %v997_v19 = vsel %vm558_vm2, %v996_v9, %v1979_v14 }
 0x2a3   : > { %v1983_v21 = vpop.permute.xlu1 %1982  ;;  %v947_v22 = vperm.slane %v941_v18, %v2569_v20  ;;  %v1003_v49 = vperm.slane %v997_v19, %v2569_v20 }
 0x2a4   : > { %v1985_v23 = vunpack.i.h.bf16 %v1983_v21  ;;  %v1984_v24 = vunpack.i.l.bf16 %v1983_v21  ;;  %v943_v26 = vsel %vm558_vm2, %v1990_v4, %v942_v16  ;;  %v999_v27 = vsel %vm558_vm2, %v1989_v6, %v998_v17 }
 0x2a5   : > { %v951_v30 = vperm.slane %v943_v26, %v2569_v20  ;;  %v952_v32 = vrot.slane %v947_v22, 4  ;;  %v1007_v33 = vperm.slane %v999_v27, %v2569_v20  ;;  %v1008_v13 = vrot.slane %v1003_v49, 4 }
 0x2a6   : > { %v928_v35 = vrot.slane %v1985_v23, 4  ;;  %v931_v36 = vsel %vm558_vm2, %v1985_v23, %v930_v48  ;;  %v984_v37 = vrot.slane %v1984_v24, 4  ;;  %v987_v38 = vsel %vm558_vm2, %v1984_v24, %v986_v25 }
 0x2a7   : > { %v964_v31 = vrot.slane %v951_v30, 4  ;;  %v1020_v39 = vrot.slane %v1007_v33, 4  ;;  %v939_v40 = vperm.slane %v931_v36, %v2569_v20  ;;  %v995_v41 = vperm.slane %v987_v38, %v2569_v20 }
 0x2a8   : > { %v929_v42 = vsel %vm558_vm2, %v928_v35, %v2748_v45  ;;  %v985_v43 = vsel %vm558_vm2, %v984_v37, %v2750_v46 }
 0x2a9   : > { %v935_v47 = vperm.slane %v929_v42, %v2569_v20  ;;  %v966_v50 = vrot.slane %v939_v40, 4  ;;  %v965_v51 = vsel %vm558_vm2, %v964_v31, %v939_v40  ;;  %v991_v52 = vperm.slane %v985_v43, %v2569_v20 }
 0x2aa   : > { %v971_v53 = vperm.slane %v965_v51, %v2574_v29  ;;  %v1021_v5 = vsel %vm558_vm2, %v1020_v39, %v995_v41  ;;  %v1022_v54 = vrot.slane %v995_v41, 4 }
 0x2ab   : > { %v954_v55 = vrot.slane %v935_v47, 4  ;;  %v953_v56 = vsel %vm558_vm2, %v952_v32, %v935_v47  ;;  %v967_v45 = vsel %vm558_vm2, %v951_v30, %v966_v50  ;;  %v1009_v57 = vsel %vm558_vm2, %v1008_v13, %v991_v52 }
 0x2ac   : > { %v959_v46 = vperm.slane %v953_v56, %v2574_v29  ;;  %v975_v59 = vperm.slane %v967_v45, %v2574_v29  ;;  %v980_v60 = vrot.slane %v971_v53, 4  ;;  %v1010_v61 = vrot.slane %v991_v52, 4 }
 0x2ad   : > { %v955_v62 = vsel %vm558_vm2, %v947_v22, %v954_v55  ;;  %v1015_v0 = vperm.slane %v1009_v57, %v2574_v29  ;;  %v1023_v1 = vsel %vm558_vm2, %v1007_v33, %v1022_v54  ;;  %v1027_v3 = vperm.slane %v1021_v5, %v2574_v29 }
 0x2ae   : > { %v963_v4 = vperm.slane %v955_v62, %v2574_v29  ;;  %v976_v6 = vrot.slane %v959_v46, 4  ;;  %v981_v8 = vsel %vm558_vm2, 0.0, %v980_v60  ;;  %v982_v9 = vrot.slane %v975_v59, 4 }
 0x2af   : > { %v1011_v10 = vsel %vm558_vm2, %v1003_v49, %v1010_v61  ;;  %v1031_v11 = vperm.slane %v1023_v1, %v2574_v29  ;;  %v1032_v14 = vrot.slane %v1015_v0, 4  ;;  %v1036_v15 = vrot.slane %v1027_v3, 4 }
 0x2b0   : > { %v978_v16 = vrot.slane %v963_v4, 4  ;;  %v983_v17 = vsel %vm558_vm2, 0.0, %v982_v9  ;;  %v1019_v18 = vperm.slane %v1011_v10, %v2574_v29  ;;  %v977_v19 = vsel %vm558_vm2, 0.0, %v976_v6 }
 0x2b1   : > { %v1037_v21 = vsel %vm558_vm2, 0.0, %v1036_v15  ;;  %v1038_v22 = vrot.slane %v1031_v11, 4  ;;  %v1056_v23 = vrot.slane %v983_v17, 4  ;;  %v1033_v24 = vsel %vm558_vm2, 0.0, %v1032_v14 }
 0x2b2   : > { %v1034_v48 = vrot.slane %v1019_v18, 4  ;;  %v979_v49 = vsel %vm558_vm2, 0.0, %v978_v16  ;;  %v1040_v25 = vsel %vm558_vm2, %v978_v16, %v959_v46  ;;  %v1051_v26 = vsel %vm558_vm2, %v982_v9, %v971_v53 }
 0x2b3   : > { %v1039_v27 = vsel %vm558_vm2, 0.0, %v1038_v22  ;;  %v1105_v30 = vsel %vm558_vm2, %v1038_v22, %v1027_v3  ;;  %v1044_v32 = vperm.slane %v1040_v25, %v2569_v20  ;;  %v1045_v33 = vrot.slane %v979_v49, 4 }
 0x2b4   : > { %v1110_v13 = vrot.slane %v1039_v27, 4  ;;  %v1035_v35 = vsel %vm558_vm2, 0.0, %v1034_v48  ;;  %v1094_v36 = vsel %vm558_vm2, %v1034_v48, %v1015_v0  ;;  %v1109_v37 = vperm.slane %v1105_v30, %v2569_v20 }
 0x2b5   : > { %v1098_v38 = vperm.slane %v1094_v36, %v2569_v20  ;;  %v1099_v31 = vrot.slane %v1035_v35, 4  ;;  %v1046_v39 = vsel %vm558_vm2, %v1045_v33, %v977_v19  ;;  %v1055_v40 = vperm.slane %v1051_v26, %v2569_v20 }
 0x2b6   : > { %v1111_v41 = vsel %vm558_vm2, %v1110_v13, %v1037_v21  ;;  %v1130_v42 = vrot.slane %v1109_v37, 4  ;;  %v1050_v43 = vperm.slane %v1046_v39, %v2569_v20  ;;  %v1057_v47 = vsel %vm558_vm2, %v1056_v23, %v981_v8 }
 0x2b7   : > { %v1100_v50 = vsel %vm558_vm2, %v1099_v31, %v1033_v24  ;;  %v1115_v51 = vperm.slane %v1111_v41, %v2569_v20  ;;  %v1118_v52 = vrot.slane %v1098_v38, 4  ;;  %v1061_v53 = vperm.slane %v1057_v47, %v2569_v20 }
 0x2b8   : > { %v1104_v5 = vperm.slane %v1100_v50, %v2569_v20  ;;  %v1064_v54 = vrot.slane %v1044_v32, 4  ;;  %v1076_v55 = vrot.slane %v1055_v40, 4  ;;  %v1062_v57 = vrot.slane %v1050_v43, 4 }
 0x2b9   : > { %v1131_v56 = vsel %vm558_vm2, %v1115_v51, %v1130_v42  ;;  %v1128_v45 = vrot.slane %v1115_v51, 4  ;;  %v1074_v46 = vrot.slane %v1061_v53, 4 }
 0x2ba   : > { %v1119_v59 = vsel %vm558_vm2, %v1104_v5, %v1118_v52  ;;  %v1139_v60 = vperm.slane %v1131_v56, %v2574_v29  ;;  %v1116_v61 = vrot.slane %v1104_v5, 4  ;;  %v1065_v62 = vsel %vm558_vm2, %v1050_v43, %v1064_v54 }
 0x2bb   : > { %v1127_v0 = vperm.slane %v1119_v59, %v2574_v29  ;;  %v1129_v1 = vsel %vm558_vm2, %v1128_v45, %v1109_v37  ;;  %v1073_v3 = vperm.slane %v1065_v62, %v2574_v29  ;;  %v1077_v4 = vsel %vm558_vm2, %v1061_v53, %v1076_v55 }
 0x2bc   : > { %v1144_v6 = vrot.slane %v1139_v60, 4  ;;  %v1117_v8 = vsel %vm558_vm2, %v1116_v61, %v1098_v38  ;;  %v1135_v9 = vperm.slane %v1129_v1, %v2574_v29  ;;  %v1085_v10 = vperm.slane %v1077_v4, %v2574_v29 }
 0x2bd   : > { %v1123_v11 = vperm.slane %v1117_v8, %v2574_v29  ;;  %v1146_v14 = vrot.slane %v1127_v0, 4  ;;  %v1063_v15 = vsel %vm558_vm2, %v1062_v57, %v1044_v32  ;;  %v1075_v16 = vsel %vm558_vm2, %v1074_v46, %v1055_v40 }
 0x2be   : > { %v1145_v17 = vsel %vm558_vm2, %v1144_v6, %v1127_v0  ;;  %v1140_v18 = vrot.slane %v1135_v9, 4  ;;  %v1090_v19 = vrot.slane %v1085_v10, 4  ;;  %v1069_v21 = vperm.slane %v1063_v15, %v2574_v29 }
 0x2bf   : > { %1424 = vmatpush.msra.mxu3 %v1145_v17  ;;  %v1147_v22 = vsel %vm558_vm2, %v1139_v60, %v1146_v14  ;;  %v1081_v23 = vperm.slane %v1075_v16, %v2574_v29  ;;  %v1142_v24 = vrot.slane %v1123_v11, 4  ;;  %v1092_v48 = vrot.slane %v1073_v3, 4 }
 0x2c0   : > { %v1141_v49 = vsel %vm558_vm2, %v1140_v18, %v1123_v11  ;;  %v1091_v25 = vsel %vm558_vm2, %v1090_v19, %v1073_v3  ;;  %1447 = vmatpush.msrb.mxu2 %v1147_v22  ;;  %v1088_v26 = vrot.slane %v1069_v21, 4 }
 0x2c1   : > { %1378 = vmatpush.msrb.mxu0 %v1141_v49  ;;  %1425 = vmatpush.msra.mxu3 %v1091_v25  ;;  %v1086_v27 = vrot.slane %v1081_v23, 4  ;;  %v1143_v30 = vsel %vm558_vm2, %v1135_v9, %v1142_v24  ;;  %v1093_v32 = vsel %vm558_vm2, %v1085_v10, %v1092_v48 }
 0x2c2   : > { %1401 = vmatpush.msrb.mxu1 %v1143_v30  ;;  %1448 = vmatpush.msrb.mxu2 %v1093_v32  ;;  %v1089_v13 = vsel %vm558_vm2, %v1081_v23, %v1088_v26 }
 0x2c3   : > { %v1087_v33 = vsel %vm558_vm2, %v1086_v27, %v1069_v21 }
 0x2c4   : > { %1379 = vmatpush.msrb.mxu0 %v1087_v33  ;;  %1402 = vmatpush.msrb.mxu1 %v1089_v13 }
 0x304   : > { %v1291_v35 = vpop.xlane.xlu2 %1290 }
 0x305   : > { %2000 = vrcp.f32 %v1291_v35  ;;  %v1312_v40 = vand.u32 2147483648, %v1291_v35  ;;  %v1310_v42 = vand.u32 2147483647, %v1291_v35  ;;  %vm1306_vm5 = vweird.f32 %v1291_v35 }
 0x307   : > { %v1313_v51 = vor.u32 1.1754944e-38, %v1312_v40  ;;  %vm1311_vm7 = vcmp.eq.f32.partialorder %v1310_v42, 8.507059e+37 }
 0x30b   : > { %v1300_v36 = vpop.xlane.xlu1 %1299  ;;  %v2001_v37 = vpop.eup %2000 }
 0x30c   : > { %2002 = vrcp.f32 %v1300_v36  ;;  %v1302_v38 = vmul.f32 %v2001_v37, %v1291_v35  ;;  %v1297_v31 = vpop.xlane.xlu0 %1296  ;;  %vm1307_vm4 = vweird.f32 %v2001_v37  ;;  %v1357_v55 = vand.u32 2147483648, %v1300_v36 }
 0x30d   : > { %2004 = vrcp.f32 %v1297_v31  ;;  %vm1308_vm6 = vmor %vm1306_vm5, %vm1307_vm4  ;;  %v1355_v46 = vand.u32 2147483647, %v1300_v36  ;;  %v1342_v61 = vand.u32 2147483648, %v1297_v31  ;;  %vm1351_vm9 = vweird.f32 %v1300_v36 }
 0x30e   : > { %v1303_v39 = vsub.f32 1.0, %v1302_v38  ;;  %v1340_v1 = vand.u32 2147483647, %v1297_v31  ;;  %v1358_v3 = vor.u32 1.1754944e-38, %v1357_v55  ;;  %vm1336_vm13 = vweird.f32 %v1297_v31 }
 0x30f   : > { %vm1356_vm12 = vcmp.eq.f32.partialorder %v1355_v46, 8.507059e+37  ;;  %v1343_v9 = vor.u32 1.1754944e-38, %v1342_v61 }
 0x310   : > { %v1304_v41 = vmul.f32 %v2001_v37, %v1303_v39  ;;  %vm1341_vm15 = vcmp.eq.f32.partialorder %v1340_v1, 8.507059e+37 }
 0x312   : > { %v2003_v43 = vpop.eup %2002  ;;  %v1305_v47 = vadd.f32 %v2001_v37, %v1304_v41 }
 0x313   : > { %v1347_v50 = vmul.f32 %v2003_v43, %v1300_v36  ;;  %v2005_v52 = vpop.eup %2004  ;;  %vm1352_vm8 = vweird.f32 %v2003_v43 }
 0x314   : > { %v1309_v5 = vsel %vm1308_vm6, %v2001_v37, %v1305_v47  ;;  %v1332_v54 = vmul.f32 %v2005_v52, %v1297_v31  ;;  %v1294_v56 = vpop.xlane.xlu0 %1293  ;;  %vm1337_vm10 = vweird.f32 %v2005_v52  ;;  %vm1353_vm11 = vmor %vm1351_vm9, %vm1352_vm8  ;;  %vm1577_vm8 = vcmask 195584  }
 0x315   : > { %v1348_v53 = vsub.f32 1.0, %v1347_v50  ;;  %v1314_v45 = vsel %vm1311_vm7, %v1313_v51, %v1309_v5  ;;  %2006 = vrcp.f32 %v1294_v56  ;;  %vm1338_vm14 = vmor %vm1336_vm13, %vm1337_vm10  ;;  %v1327_v18 = vand.u32 2147483648, %v1294_v56 }
 0x316   : > { %v1333_v59 = vsub.f32 1.0, %v1332_v54  ;;  %v1315_v60 = vmul.f32 %v2757_v58, %v1314_v45  ;;  %v1325_v21 = vand.u32 2147483647, %v1294_v56  ;;  %vm1321_vm5 = vweird.f32 %v1294_v56 }
 0x317   : > { %v1349_v57 = vmul.f32 %v2003_v43, %v1348_v53  ;;  %v1328_v22 = vor.u32 1.1754944e-38, %v1327_v18 }
 0x318   : > { %v1334_v0 = vmul.f32 %v2005_v52, %v1333_v59  ;;  %1853 = vmatmul.msk.f32.vlgmr.msrb.gmra.mxu0 %vm523_vm0, %v1315_v60  ;;  %1608 = vst.msk [vmem:[%s2860_s15] sm:$0xff] %vm523_vm0, %v1315_v60  ;;  %vm1326_vm7 = vcmp.eq.f32.partialorder %v1325_v21, 8.507059e+37 }
 0x319   : > { %v1350_v62 = vadd.f32 %v2003_v43, %v1349_v57 }
 0x31a   : > { %v1335_v6 = vadd.f32 %v2005_v52, %v1334_v0 }
 0x31b   : > { %v1354_v4 = vsel %vm1353_vm11, %v2003_v43, %v1350_v62  ;;  %v2007_v8 = vpop.eup %2006 }
 0x31c   : > { %v1359_v58 = vsel %vm1356_vm12, %v1358_v3, %v1354_v4  ;;  %v1339_v11 = vsel %vm1338_vm14, %v2005_v52, %v1335_v6  ;;  %v1317_v14 = vmul.f32 %v2007_v8, %v1294_v56  ;;  %vm1322_vm4 = vweird.f32 %v2007_v8 }
 0x31d   : > { %v1360_v10 = vmul.f32 %v2761_v63, %v1359_v58  ;;  %v1344_v15 = vsel %vm1341_vm15, %v1343_v9, %v1339_v11  ;;  %vm1323_vm6 = vmor %vm1321_vm5, %vm1322_vm4 }
 0x31e   : > { %v1318_v16 = vsub.f32 1.0, %v1317_v14  ;;  %v1345_v17 = vmul.f32 %v2765_v2, %v1344_v15 }
 0x31f   : > { %1856 = vmatmul.msk.f32.vlgmr.msrb.gmra.mxu2 %vm523_vm0, %v1360_v10  ;;  %1611 = vst.msk [vmem:[%s2860_s15 + $0x18] sm:$0xff] %vm523_vm0, %v1360_v10 }
 0x320   : > { %v1319_v19 = vmul.f32 %v2007_v8, %v1318_v16  ;;  %1855 = vmatmul.msk.f32.vlgmr.msra.gmra.mxu3 %vm523_vm0, %v1345_v17  ;;  %1610 = vst.msk [vmem:[%s2860_s15 + $0x10] sm:$0xff] %vm523_vm0, %v1345_v17 }
 0x322   : > { %v1320_v63 = vadd.f32 %v2007_v8, %v1319_v19 }
 0x324   : > { %v1324_v23 = vsel %vm1323_vm6, %v2007_v8, %v1320_v63 }
 0x325   : > { %v1329_v24 = vsel %vm1326_vm7, %v1328_v22, %v1324_v23 }
 0x326   : > { %v1330_v48 = vmul.f32 %v2769_v7, %v1329_v24 }
 0x328   : > { %1854 = vmatmul.msk.f32.vlgmr.msrb.gmra.mxu1 %vm523_vm0, %v1330_v48  ;;  %1609 = vst.msk [vmem:[%s2860_s15 + $0x8] sm:$0xff] %vm523_vm0, %v1330_v48 }
 0x395   : > { %v1381_v2 = vpop.f32.mrf.mxu0 }
 0x396   : > { %v1382_v49 = vadd.f32 %v1381_v2, %v2727_v34 }
 0x398   : > { %v1455_v30 = vrot.slane %v1382_v49, 4 }
 0x3a2   : > { %v1450_v25 = vpop.f32.mrf.mxu2 }
 0x3a3   : > { %v1451_v26 = vadd.f32 %v1450_v25, %v2735_v12  ;;  %v1427_v27 = vpop.f32.mrf.mxu3 }
 0x3a4   : > { %v1428_v32 = vadd.f32 %v1427_v27, %v2740_v44 }
 0x3a5   : > { %v1465_v33 = vrot.slane %v1451_v26, 4  ;;  %v1404_v13 = vpop.f32.mrf.mxu1 }
 0x3a6   : > { %v1453_v35 = vrot.slane %v1428_v32, 4  ;;  %v1456_v36 = vsel %vm558_vm2, %v1428_v32, %v1455_v30  ;;  %v1405_v7 = vadd.f32 %v1404_v13, %v2718_v28  ;;  %v519_v13 = vld [vmem:[#allocation11 + $0x8] sm:$0xff] }
 0x3a7   : > { %v1464_v37 = vperm.slane %v1456_v36, %v2569_v20 }
 0x3a8   : > { %v1454_v38 = vsel %vm558_vm2, %v1453_v35, %v1382_v49  ;;  %v1466_v34 = vsel %vm558_vm2, %v1465_v33, %v1405_v7  ;;  %v1467_v31 = vrot.slane %v1405_v7, 4  ;;  %v521_v33 = vld [vmem:[#allocation11 + $0x18] sm:$0xff]  ;;  %v518_v35 = vld [vmem:[#allocation11] sm:$0xff] }
 0x3a9   : > { %v1460_v12 = vperm.slane %v1454_v38, %v2569_v20  ;;  %v1472_v39 = vperm.slane %v1466_v34, %v2569_v20  ;;  %v1491_v41 = vrot.slane %v1464_v37, 4  ;;  %1597 = vmatpush.msra.mxu0 %v521_v33 }
 0x3aa   : > { %v1468_v44 = vsel %vm558_vm2, %v1451_v26, %v1467_v31 }
 0x3ab   : > { %v1479_v40 = vrot.slane %v1460_v12, 4  ;;  %v1476_v42 = vperm.slane %v1468_v44, %v2569_v20  ;;  %v1477_v43 = vrot.slane %v1472_v39, 4 }
 0x3ad   : > { %v1478_v28 = vsel %vm558_vm2, %v1477_v43, %v1460_v12  ;;  %v1480_v47 = vsel %vm558_vm2, %v1472_v39, %v1479_v40  ;;  %v1489_v50 = vrot.slane %v1476_v42, 4  ;;  %v1492_v51 = vsel %vm558_vm2, %v1476_v42, %v1491_v41 }
 0x3ae   : > { %v1484_v52 = vperm.slane %v1478_v28, %v2574_v29  ;;  %v1488_v53 = vperm.slane %v1480_v47, %v2574_v29  ;;  %v1500_v5 = vperm.slane %v1492_v51, %v2574_v29 }
 0x3af   : > { %v1490_v54 = vsel %vm558_vm2, %v1489_v50, %v1464_v37 }
 0x3b0   : > { %v1496_v55 = vperm.slane %v1490_v54, %v2574_v29  ;;  %v1501_v56 = vrot.slane %v1484_v52, 4  ;;  %v1503_v45 = vrot.slane %v1488_v53, 4  ;;  %v1507_v57 = vrot.slane %v1500_v5, 4 }
 0x3b2   : > { %v1504_v46 = vsel %vm558_vm2, 0.0, %v1503_v45  ;;  %v1508_v59 = vsel %vm558_vm2, 0.0, %v1507_v57  ;;  %v1509_v60 = vsel %vm558_vm2, %v1503_v45, %v1484_v52  ;;  %v1502_v61 = vsel %vm558_vm2, 0.0, %v1501_v56 }
 0x3b3   : > { %v1514_v62 = vrot.slane %v1504_v46, 4  ;;  %v1525_v0 = vrot.slane %v1508_v59, 4  ;;  %v1505_v1 = vrot.slane %v1496_v55, 4  ;;  %v1513_v3 = vperm.slane %v1509_v60, %v2569_v20 }
 0x3b4   : > { %v1520_v4 = vsel %vm558_vm2, %v1507_v57, %v1496_v55 }
 0x3b5   : > { %v1506_v6 = vsel %vm558_vm2, 0.0, %v1505_v1  ;;  %v1515_v58 = vsel %vm558_vm2, %v1514_v62, %v1502_v61  ;;  %v1524_v8 = vperm.slane %v1520_v4, %v2569_v20  ;;  %v1533_v9 = vrot.slane %v1513_v3, 4 }
 0x3b6   : > { %v1519_v10 = vperm.slane %v1515_v58, %v2569_v20  ;;  %v1526_v11 = vsel %vm558_vm2, %v1525_v0, %v1506_v6 }
 0x3b7   : > { %v1530_v14 = vperm.slane %v1526_v11, %v2569_v20  ;;  %v1545_v15 = vrot.slane %v1524_v8, 4 }
 0x3b8   : > { %v1534_v16 = vsel %vm558_vm2, %v1519_v10, %v1533_v9  ;;  %v1531_v17 = vrot.slane %v1519_v10, 4 }
 0x3b9   : > { %v1542_v18 = vperm.slane %v1534_v16, %v2574_v29  ;;  %v1546_v19 = vsel %vm558_vm2, %v1530_v14, %v1545_v15  ;;  %v1543_v21 = vrot.slane %v1530_v14, 4 }
 0x3ba   : > { %v1554_v63 = vperm.slane %v1546_v19, %v2574_v29  ;;  %v1532_v22 = vsel %vm558_vm2, %v1531_v17, %v1513_v3 }
 0x3bb   : > { %v1561_v23 = vrot.slane %v1542_v18, 4  ;;  %v1538_v24 = vperm.slane %v1532_v22, %v2574_v29  ;;  %v1544_v48 = vsel %vm558_vm2, %v1543_v21, %v1524_v8 }
 0x3bc   : > { %v1559_v2 = vrot.slane %v1554_v63, 4  ;;  %v1550_v20 = vperm.slane %v1544_v48, %v2574_v29  ;;  %v520_v29 = vld [vmem:[#allocation11 + $0x10] sm:$0xff] }
 0x3bd   : > { %v1562_v49 = vsel %vm558_vm2, %v1554_v63, %v1561_v23  ;;  %v1557_v25 = vrot.slane %v1538_v24, 4  ;;  %1598 = vmatpush.msra.mxu0 %v520_v29 }
 0x3be   : > { %1572 = vrot.lane.b32.xlu2 %v1562_v49, %s2311_s18  ;;  %v1560_v26 = vsel %vm558_vm2, %v1559_v2, %v1542_v18  ;;  %v1555_v27 = vrot.slane %v1550_v20, 4 }
 0x3bf   : > { %1568 = vrot.lane.b32.xlu0 %v1560_v26, %s2312_s23  ;;  %v1558_v30 = vsel %vm558_vm2, %v1550_v20, %v1557_v25  ;;  %1599 = vmatpush.msra.mxu0 %v519_v13 }
 0x3c0   : > { %1564 = vrot.lane.b32.xlu1 %v1558_v30, %s2313_s21  ;;  %v1556_v32 = vsel %vm558_vm2, %v1555_v27, %v1538_v24 }
 0x3c1   : > { %1600 = vmatpush.msra.mxu0 %v518_v35 }
 0x418   : > { %v1573_v38 = vpop.permute.xlu2 %1572 }
 0x431   : > { %v1569_v7 = vpop.permute.xlu0 %1568 }
 0x432   : > { %v1565_v36 = vpop.permute.xlu1 %1564 }
 0x433   : > { %v1575_v37 = vsel %vm1148_vm3, %v1556_v32, %v1565_v36 }
 0x434   : > { %v1576_v34 = vsel %vm523_vm0, %v1575_v37, %v1569_v7 }
 0x435   : > { %v1578_v31 = vsel %vm1577_vm8, %v1576_v34, %v1573_v38 }
 0x436   : > { %1857 = vmatmul.msk.f32.vlgmr.msra.gmra.mxu0 %vm452_vm1, %v1578_v31 }
 0x437   : > { %2215 = shalt.err (!%p2212_p10)
}
 0x438   : > { %s2314_s10 = smov 128   ;;  %s1834_s15 = sshll.u32 %s2529_s3, 3  ;;  %v1991_v12 = vld [vmem:[%s2985_s6] ss:$0 sm:$0xff] }
 0x439   : > { %1889 = dma.vmem_to_hbm [thread:$0]  (%p2436_p7), %s1645_s25, 512, %s1647_s30, %s1618_s19, %s2314_s10, %s2314_s10, %s2313_s21  }
 0x43a   : > { %s1860_s18 = sshll.u32 %s2381_s9, 3  ;;  %s433_s13 = scalar_lea.vmem [#allocation13], %s1834_s15 }
 0x43b   : > { %s1628_s24 = scalar_lea.hbm %s2986_s7, %s1860_s18  ;;  %s1630_s17 = sshll.u32 %s433_s13, 4  ;;  %s1631_s17 = int_to_ptr.vmem [resolvable:$true] %s1630_s17 }
 0x43c   : > { %s1632_s1 = sshll.u32 %s1628_s24, 4  ;;  %s1613_s9 = scalar_lea.sflag [#allocation4], %s2529_s3  ;;  %s1633_s1 = int_to_ptr.hbm [resolvable:$true] %s1632_s1 }
 0x43d   : > { %s2230_s21 = sshra.s32 %s1633_s1, 4  ;;  %s2236_s12 = scalar_lea.hbm %s2986_s7, 16  ;;  %s2231_s21 = int_to_ptr.hbm [resolvable:$true] %s2230_s21 }
 0x43e   : > { %s2232_s25 = scalar_lea.hbm %s2231_s21, 8  ;;  %p2237_p1 = scmp.lt.s32.totalorder %s2231_s21, %s2986_s7 }
 0x43f   : > { %p2233_p12 = scmp.ne.s32.totalorder %s2231_s21, %s2232_s25  ;;  %p2238_p11 = scmp.lt.s32.totalorder %s2236_s12, %s2232_s25 }
 0x441   : > { %p2234_p8 = pnand %p2233_p12, %p2436_p7  ;;  %p2239_p4 = por %p2238_p11, %p2237_p1 }
 0x443   : > { %p2235_p2 = pneg %p2234_p8 }
 0x445   : > { %p2240_p9 = pnand %p2239_p4, %p2235_p2 }
 0x4b3   : > { %v1602_v39 = vpop.f32.mrf.mxu0 }
 0x4b4   : > { %v1603_v44 = vadd.f32 %v1991_v12, %v1602_v39 }
 0x4b6   : > { %v1605_v40 = vmax.f32 %v1603_v44, 0.0 }
 0x4b8   : > { %v1606_v41 = vadd.f32 %v1605_v40, %v1578_v31 }
 0x4ba   : > { %1607 = vst.msk [vmem:[%s433_s13] sm:$0xff] %vm452_vm1, %v1606_v41 }
 0x4bb   : > { %2243 = shalt.err (!%p2240_p9)
}
 0x4bc   : > { %1888 = dma.vmem_to_hbm [thread:$0]  (%p2436_p7), %s1631_s17, 128, %s1633_s1, %s1613_s9  }
 0x4bd PF: > { %s3022_s20 = sld [smem:[#allocation23_spill]]  ;;  %s1661_s10 = sand.u32 1, %s2286_s27  }
 0x4be   : > { %s1662_s15 = scalar_lea.sflag [#allocation4], %s1661_s10 }
 0x4c3   : > { %p3023_p13 = scmp.ge.s32.totalorder %s3022_s20, 2 }
 0x4c5   : > { %p1913_p0 = pnand %p3023_p13, %p2395_p6 }
 0x4c7   : > { %p1914_p3 = pneg %p1913_p0 }
 0x4c9   : > { %2277 = dma.done.wait (%p1914_p3), %s1662_s15, 128  }
 0x4ca   : > { %2279 = vsyncadd (%p1914_p3), %s1662_s15, 4294967168  ;;  %s1672_s18 = scalar_lea.sflag [#allocation15], %s1661_s10 }
 0x4cb   : > { %2281 = dma.done.wait (%p1914_p3), %s1672_s18, 512  }
 0x4cc   : > { %2283 = vsyncadd (%p1914_p3), %s1672_s18, 4294966784  ;;  %s3024_s30 = sld [smem:[#allocation25_spill]]  ;;  %s3027_s27 = smov %s2290_s28 }
 0x4cd   : > { %s3025_s23 = sld [smem:[#allocation22_spill]] }
 0x4ce   : > { %s3026_s29 = sld [smem:[#allocation26_spill]] }
 0x4d2   : > { %p28_p7 = scmp.ge.s32.totalorder %s3024_s30, 4  }
 0x4d3   : > { %s3028_s28 = smov %s3025_s23 }
 0x4d4   :  { %30 = sbr.rel (!%p28_p7) target bundleno = 13 (0xd), region = 139 }
 0x4d9   :  { %1678 = vsyncpa [#allocation3], 1 }
 0x4da   :  { %1680 = vsyncpa [#allocation3 + $0x1], 1 }
 0x4db   :  { %1681 = vsyncpa [#allocation6], 1 }
 0x4dc   :  { %1683 = vsyncpa [#allocation6 + $0x1], 1 }
 0x4dd   :  { %1684 = vsyncpa [#allocation9], 1 }
 0x4de   :  { %1685 = vsyncpa [#allocation12], 1 }
 0x4df   :  { %1686 = vsyncpa [#allocation4], 1 }
 0x4e0   :  { %1688 = vsyncpa [#allocation4 + $0x1], 1 }
 0x4e1   :  { %1689 = vsyncpa [#allocation15], 1 }
 0x4e2   :  { %1691 = vsyncpa [#allocation15 + $0x1], 1 }

</bundles_post_ra>
